<compile_context>
chip_gen: v7x
topology: tpu7x:2x2x1
jax: 0.10.0
libtpu: 0.0.40
codegen_flags: <defaults>
</compile_context>

<pallas_src>
import functools

import jax
import jax.numpy as jnp
from jax.experimental import pallas as pl
from jax.experimental.pallas import tpu as pltpu

_LANE = 128


def _round_up(n, m):
    return ((n + m - 1) // m) * m


# --------------------------------------------------------------------------- #
# Kernel
# --------------------------------------------------------------------------- #
def _make_autoencoder_kernel(relu_flags):
    """Kernel applying len(relu_flags) linear layers to one batch tile."""
    n_layers = len(relu_flags)

    def kernel(x_ref, w0_ref, w_ref, b_ref, o_ref):
        # Layer 0: x is already bf16 (cast in wrapper), in-dim kept logical.
        h = jnp.dot(x_ref[...], w0_ref[...],
                    preferred_element_type=jnp.float32) + b_ref[0]
        if relu_flags[0]:
            h = jnp.maximum(h, 0.0)
        # Remaining layers: uniform (d_pad, d_pad) weights from the stacked slab,
        # indexed with a static Python index (fully unrolled).
        for i in range(1, n_layers):
            h = jnp.dot(h.astype(jnp.bfloat16), w_ref[i - 1],
                        preferred_element_type=jnp.float32) + b_ref[i]
            if relu_flags[i]:
                h = jnp.maximum(h, 0.0)
        o_ref[...] = h.astype(o_ref.dtype)

    return kernel


# --------------------------------------------------------------------------- #
# Parameter construction (mirrors the PyTorch module)
# --------------------------------------------------------------------------- #
def init_autoencoder_params(key, input_dim, latent_dim, encoder_layers, decoder_layers):
    """Parameter init mirroring torch.nn.Linear defaults and the module's layout.

    Returns (params, relu_flags): params = [w0, b0, w1, b1, ...] with w_i stored
    pre-transposed as (in_i, out_i) and b_i as (1, out_i).  ReLU follows every
    layer except the encoder-final (-> latent) and decoder-final (-> output)
    Linear, exactly as in the PyTorch module.
    """
    dims = ([input_dim] + list(encoder_layers) + [latent_dim]
            + list(decoder_layers) + [input_dim])
    n_layers = len(dims) - 1
    enc_final_idx = len(encoder_layers)   # layer producing the latent
    dec_final_idx = n_layers - 1          # last layer overall
    relu_flags = tuple(i != enc_final_idx and i != dec_final_idx
                       for i in range(n_layers))

    params = []
    for i in range(n_layers):
        fan_in, fan_out = dims[i], dims[i + 1]
        key, wk, bk = jax.random.split(key, 3)
        bound = 1.0 / jnp.sqrt(jnp.float32(fan_in))
        w = jax.random.uniform(wk, (fan_in, fan_out), jnp.float32, -bound, bound)
        b = jax.random.uniform(bk, (1, fan_out), jnp.float32, -bound, bound)
        params += [w, b]
    return params, relu_flags


def _fuse_activationless_layers(params, relu_flags):
    """Fuses consecutive Linear layers that have no activation between them
    (here: encoder-final -> latent -> decoder-first).  Done in f32 on the host;
    forward output is mathematically identical."""
    n = len(relu_flags)
    ws = [params[2 * i] for i in range(n)]
    bs = [params[2 * i + 1] for i in range(n)]
    fw, fb, fr = [], [], []
    i = 0
    while i < n:
        w, b = ws[i], bs[i]
        while i + 1 < n and not relu_flags[i]:
            w = w @ ws[i + 1]
            b = b @ ws[i + 1] + bs[i + 1]
            i += 1
        fw.append(w)
        fb.append(b)
        fr.append(relu_flags[i])
        i += 1
    return fw, fb, tuple(fr)


def prepare_autoencoder_params(params, relu_flags):
    """One-time (outside the jitted path) fuse + pad + cast + stack.

    Returns ((w0, w_stack, b_stack), fused_relu_flags):
      w0      : (input_dim, d_pad)      bf16  (layer-0 weight, in-dim unpadded)
      w_stack : (L-1, d_pad, d_pad)     bf16  (remaining weights, zero-padded)
      b_stack : (L, 1, d_pad)           f32   (all biases, zero-padded)
    """
    ws, bs, fused_flags = _fuse_activationless_layers(params, relu_flags)
    n = len(ws)
    assert n >= 2, "expected at least 2 layers after fusion"
    d_pad = max(_round_up(w.shape[1], _LANE) for w in ws)

    w0 = jnp.zeros((ws[0].shape[0], d_pad), jnp.bfloat16)
    w0 = w0.at[:, : ws[0].shape[1]].set(ws[0].astype(jnp.bfloat16))

    w_stack = jnp.zeros((n - 1, d_pad, d_pad), jnp.bfloat16)
    for i in range(1, n):
        fi, fo = ws[i].shape
        w_stack = w_stack.at[i - 1, :fi, :fo].set(ws[i].astype(jnp.bfloat16))

    b_stack = jnp.zeros((n, 1, d_pad), jnp.float32)
    for i in range(n):
        b_stack = b_stack.at[i, :, : bs[i].shape[1]].set(bs[i])

    return (w0, w_stack, b_stack), fused_flags


# --------------------------------------------------------------------------- #
# Forward pass
# --------------------------------------------------------------------------- #
@functools.partial(jax.jit, static_argnames=("relu_flags", "tile_b"))
def autoencoder_forward(x, w0, w_stack, b_stack, relu_flags, tile_b=512):
    """Full autoencoder forward as a single Pallas call (batch tiled)."""
    batch, input_dim = x.shape
    d_pad = w_stack.shape[-1]

    # bf16 input: halves the x DMA, matches the reference numerics (first dot is
    # bf16 anyway).  No lane padding of x: layer-0 BlockSpec last dim == full
    # array extent, which is legal and avoids a host zero-materialize + scatter.
    x_bf = x.astype(jnp.bfloat16)
    b_pad = _round_up(batch, tile_b)
    if b_pad != batch:
        x_bf = jnp.pad(x_bf, ((0, b_pad - batch), (0, 0)))

    kernel = _make_autoencoder_kernel(relu_flags)

    out = pl.pallas_call(
        kernel,
        out_shape=jax.ShapeDtypeStruct((b_pad, d_pad), jnp.float32),
        grid_spec=pltpu.PrefetchScalarGridSpec(
            num_scalar_prefetch=0,
            grid=(b_pad // tile_b,),
            in_specs=[
                pl.BlockSpec((tile_b, input_dim), lambda i: (i, 0)),
                pl.BlockSpec(w0.shape, lambda i: (0, 0)),
                pl.BlockSpec(w_stack.shape, lambda i: (0, 0, 0)),
                pl.BlockSpec(b_stack.shape, lambda i: (0, 0, 0)),
            ],
            out_specs=pl.BlockSpec((tile_b, d_pad), lambda i: (i, 0)),
        ),
        compiler_params=pltpu.CompilerParams(
            dimension_semantics=("parallel",),  # 2 tiles -> one per TC on v7x
        ),
    )(x_bf, w0, w_stack, b_stack)
    return out[:batch, :input_dim]


# --------------------------------------------------------------------------- #
# References
# --------------------------------------------------------------------------- #
def forward_ref_kernel_numerics(x, w0, w_stack, b_stack, relu_flags):
    """Pure-JAX reference with the kernel's exact numerics (fused/padded params,
    bf16 MXU inputs, f32 accumulation)."""
    h = jnp.dot(x.astype(jnp.bfloat16), w0,
                preferred_element_type=jnp.float32) + b_stack[0]
    if relu_flags[0]:
        h = jnp.maximum(h, 0.0)
    for i in range(1, len(relu_flags)):
        h = jnp.dot(h.astype(jnp.bfloat16), w_stack[i - 1],
                    preferred_element_type=jnp.float32) + b_stack[i]
        if relu_flags[i]:
            h = jnp.maximum(h, 0.0)
    return h


def forward_ref_f32(x, params, relu_flags):
    """Original module semantics: unfused, per-layer, f32 throughout."""
    h = x
    for i, flag in enumerate(relu_flags):
        h = h @ params[2 * i] + params[2 * i + 1]
        if flag:
            h = jnp.maximum(h, 0.0)
    return h


# --------------------------------------------------------------------------- #
if __name__ == "__main__":
    # Shapes consistent with the module's MLP structure.  batch=1024 with
    # tile_b=512 -> grid of exactly 2 parallel tiles (one per v7x TensorCore,
    # only 2 cheap serial steps on single-TC v5e/v6e).
    input_dim = 64
    latent_dim = 8
    encoder_layers = [32, 16]
    decoder_layers = [16, 32]
    batch = 1024
    tile_b = 512

    key = jax.random.PRNGKey(0)
    key, pkey, xkey = jax.random.split(key, 3)

    params, relu_flags = init_autoencoder_params(
        pkey, input_dim, latent_dim, encoder_layers, decoder_layers
    )
    # One-time parameter preparation (fuse latent layers, pad, cast, stack) —
    # deliberately outside the jitted forward.
    (w0, w_stack, b_stack), fused_flags = prepare_autoencoder_params(params, relu_flags)

    x = jax.random.normal(xkey, (batch, input_dim), dtype=jnp.float32)

    out = autoencoder_forward(x, w0, w_stack, b_stack,
                              relu_flags=fused_flags, tile_b=tile_b)
    out = jax.block_until_ready(out)
    assert out.shape == (batch, input_dim)

    # Tight check: pure-JAX reference with identical numerics to the kernel.
    ref_tight = forward_ref_kernel_numerics(x, w0, w_stack, b_stack, fused_flags)
    ref_tight = ref_tight[:, :input_dim]
    assert jnp.allclose(out, ref_tight, atol=1e-4, rtol=1e-4), \
        "mismatch vs kernel-numerics reference"

    # Loose sanity check: original (unfused, f32) module semantics; differences
    # come only from bf16 MXU inputs and the exact latent-layer fusion.
    ref_f32 = forward_ref_f32(x, params, relu_flags)
    assert jnp.allclose(out, ref_f32, atol=5e-2, rtol=5e-2), \
        "mismatch vs f32 module-semantics reference"

    print("KERNEL_OK")
</pallas_src>

<mosaic_0001>
module attributes {stable_mosaic.version = 11 : i64} {
  func.func @kernel(%arg0: i32, %arg1: memref<512x64xbf16, #tpu.memory_space<vmem>>, %arg2: memref<64x128xbf16, #tpu.memory_space<vmem>>, %arg3: memref<4x128x128xbf16, #tpu.memory_space<vmem>>, %arg4: memref<5x1x128xf32, #tpu.memory_space<vmem>>, %arg5: memref<512x128xf32, #tpu.memory_space<vmem>>) attributes {dimension_semantics = [#tpu.dimension_semantics<parallel>], iteration_bounds = array<i64: 2>, scalar_prefetch = 0 : i64, scratch_operands = 0 : i64, tpu.core_type = #tpu.core_type<tc>, window_params = [{transform_indices = @transform_0, window_bounds = array<i64: 512, 64>}, {pipeline_mode = #tpu.pipeline_mode<synchronous>, transform_indices = @transform_1, window_bounds = array<i64: 64, 128>}, {pipeline_mode = #tpu.pipeline_mode<synchronous>, transform_indices = @transform_2, window_bounds = array<i64: 4, 128, 128>}, {pipeline_mode = #tpu.pipeline_mode<synchronous>, transform_indices = @transform_3, window_bounds = array<i64: 5, 1, 128>}, {transform_indices = @transform_4, window_bounds = array<i64: 512, 128>}]} {
    %c0 = arith.constant 0 : index
    %c0_0 = arith.constant 0 : index
    %0 = vector.load %arg1[%c0, %c0_0] : memref<512x64xbf16, #tpu.memory_space<vmem>>, vector<512x64xbf16>
    %c0_1 = arith.constant 0 : index
    %c0_2 = arith.constant 0 : index
    %1 = vector.load %arg2[%c0_1, %c0_2] : memref<64x128xbf16, #tpu.memory_space<vmem>>, vector<64x128xbf16>
    %cst = arith.constant dense<0.000000e+00> : vector<512x128xf32>
    %2 = tpu.matmul %0, %1, %cst {dimension_numbers = #tpu.dot_dimension_numbers<[1], [0], [0], [1], [0, 0, 1, 1], [], []>} : vector<512x64xbf16>, vector<64x128xbf16>, vector<512x128xf32> -> vector<512x128xf32>
    %c0_3 = arith.constant 0 : index
    %c0_4 = arith.constant 0 : index
    %c0_5 = arith.constant 0 : index
    %3 = vector.load %arg4[%c0_3, %c0_4, %c0_5] : memref<5x1x128xf32, #tpu.memory_space<vmem>>, vector<1x1x128xf32>
    %4 = vector.shape_cast %3 : vector<1x1x128xf32> to vector<1x128xf32>
    %5 = vector.broadcast %4 : vector<1x128xf32> to vector<512x128xf32>
    %6 = arith.addf %2, %5 : vector<512x128xf32>
    %cst_6 = arith.constant 0.000000e+00 : f32
    %7 = vector.broadcast %cst_6 : f32 to vector<512x128xf32>
    %8 = arith.maximumf %6, %7 : vector<512x128xf32>
    %9 = arith.truncf %8 : vector<512x128xf32> to vector<512x128xbf16>
    %c0_7 = arith.constant 0 : index
    %c0_8 = arith.constant 0 : index
    %c0_9 = arith.constant 0 : index
    %10 = vector.load %arg3[%c0_7, %c0_8, %c0_9] : memref<4x128x128xbf16, #tpu.memory_space<vmem>>, vector<1x128x128xbf16>
    %11 = vector.shape_cast %10 : vector<1x128x128xbf16> to vector<128x128xbf16>
    %cst_10 = arith.constant dense<0.000000e+00> : vector<512x128xf32>
    %12 = tpu.matmul %9, %11, %cst_10 {dimension_numbers = #tpu.dot_dimension_numbers<[1], [0], [0], [1], [0, 0, 1, 1], [], []>} : vector<512x128xbf16>, vector<128x128xbf16>, vector<512x128xf32> -> vector<512x128xf32>
    %c1 = arith.constant 1 : index
    %c0_11 = arith.constant 0 : index
    %c0_12 = arith.constant 0 : index
    %13 = vector.load %arg4[%c1, %c0_11, %c0_12] : memref<5x1x128xf32, #tpu.memory_space<vmem>>, vector<1x1x128xf32>
    %14 = vector.shape_cast %13 : vector<1x1x128xf32> to vector<1x128xf32>
    %15 = vector.broadcast %14 : vector<1x128xf32> to vector<512x128xf32>
    %16 = arith.addf %12, %15 : vector<512x128xf32>
    %cst_13 = arith.constant 0.000000e+00 : f32
    %17 = vector.broadcast %cst_13 : f32 to vector<512x128xf32>
    %18 = arith.maximumf %16, %17 : vector<512x128xf32>
    %19 = arith.truncf %18 : vector<512x128xf32> to vector<512x128xbf16>
    %c1_14 = arith.constant 1 : index
    %c0_15 = arith.constant 0 : index
    %c0_16 = arith.constant 0 : index
    %20 = vector.load %arg3[%c1_14, %c0_15, %c0_16] : memref<4x128x128xbf16, #tpu.memory_space<vmem>>, vector<1x128x128xbf16>
    %21 = vector.shape_cast %20 : vector<1x128x128xbf16> to vector<128x128xbf16>
    %cst_17 = arith.constant dense<0.000000e+00> : vector<512x128xf32>
    %22 = tpu.matmul %19, %21, %cst_17 {dimension_numbers = #tpu.dot_dimension_numbers<[1], [0], [0], [1], [0, 0, 1, 1], [], []>} : vector<512x128xbf16>, vector<128x128xbf16>, vector<512x128xf32> -> vector<512x128xf32>
    %c2 = arith.constant 2 : index
    %c0_18 = arith.constant 0 : index
    %c0_19 = arith.constant 0 : index
    %23 = vector.load %arg4[%c2, %c0_18, %c0_19] : memref<5x1x128xf32, #tpu.memory_space<vmem>>, vector<1x1x128xf32>
    %24 = vector.shape_cast %23 : vector<1x1x128xf32> to vector<1x128xf32>
    %25 = vector.broadcast %24 : vector<1x128xf32> to vector<512x128xf32>
    %26 = arith.addf %22, %25 : vector<512x128xf32>
    %cst_20 = arith.constant 0.000000e+00 : f32
    %27 = vector.broadcast %cst_20 : f32 to vector<512x128xf32>
    %28 = arith.maximumf %26, %27 : vector<512x128xf32>
    %29 = arith.truncf %28 : vector<512x128xf32> to vector<512x128xbf16>
    %c2_21 = arith.constant 2 : index
    %c0_22 = arith.constant 0 : index
    %c0_23 = arith.constant 0 : index
    %30 = vector.load %arg3[%c2_21, %c0_22, %c0_23] : memref<4x128x128xbf16, #tpu.memory_space<vmem>>, vector<1x128x128xbf16>
    %31 = vector.shape_cast %30 : vector<1x128x128xbf16> to vector<128x128xbf16>
    %cst_24 = arith.constant dense<0.000000e+00> : vector<512x128xf32>
    %32 = tpu.matmul %29, %31, %cst_24 {dimension_numbers = #tpu.dot_dimension_numbers<[1], [0], [0], [1], [0, 0, 1, 1], [], []>} : vector<512x128xbf16>, vector<128x128xbf16>, vector<512x128xf32> -> vector<512x128xf32>
    %c3 = arith.constant 3 : index
    %c0_25 = arith.constant 0 : index
    %c0_26 = arith.constant 0 : index
    %33 = vector.load %arg4[%c3, %c0_25, %c0_26] : memref<5x1x128xf32, #tpu.memory_space<vmem>>, vector<1x1x128xf32>
    %34 = vector.shape_cast %33 : vector<1x1x128xf32> to vector<1x128xf32>
    %35 = vector.broadcast %34 : vector<1x128xf32> to vector<512x128xf32>
    %36 = arith.addf %32, %35 : vector<512x128xf32>
    %cst_27 = arith.constant 0.000000e+00 : f32
    %37 = vector.broadcast %cst_27 : f32 to vector<512x128xf32>
    %38 = arith.maximumf %36, %37 : vector<512x128xf32>
    %39 = arith.truncf %38 : vector<512x128xf32> to vector<512x128xbf16>
    %c3_28 = arith.constant 3 : index
    %c0_29 = arith.constant 0 : index
    %c0_30 = arith.constant 0 : index
    %40 = vector.load %arg3[%c3_28, %c0_29, %c0_30] : memref<4x128x128xbf16, #tpu.memory_space<vmem>>, vector<1x128x128xbf16>
    %41 = vector.shape_cast %40 : vector<1x128x128xbf16> to vector<128x128xbf16>
    %cst_31 = arith.constant dense<0.000000e+00> : vector<512x128xf32>
    %42 = tpu.matmul %39, %41, %cst_31 {dimension_numbers = #tpu.dot_dimension_numbers<[1], [0], [0], [1], [0, 0, 1, 1], [], []>} : vector<512x128xbf16>, vector<128x128xbf16>, vector<512x128xf32> -> vector<512x128xf32>
    %c4 = arith.constant 4 : index
    %c0_32 = arith.constant 0 : index
    %c0_33 = arith.constant 0 : index
    %43 = vector.load %arg4[%c4, %c0_32, %c0_33] : memref<5x1x128xf32, #tpu.memory_space<vmem>>, vector<1x1x128xf32>
    %44 = vector.shape_cast %43 : vector<1x1x128xf32> to vector<1x128xf32>
    %45 = vector.broadcast %44 : vector<1x128xf32> to vector<512x128xf32>
    %46 = arith.addf %42, %45 : vector<512x128xf32>
    %c0_34 = arith.constant 0 : index
    %c0_35 = arith.constant 0 : index
    %47 = vector.load %arg5[%c0_34, %c0_35] : memref<512x128xf32, #tpu.memory_space<vmem>>, vector<512x128xf32>
    tpu.vector_store %arg5[%c0_34, %c0_35], %46 {strides = array<i32>} : memref<512x128xf32, #tpu.memory_space<vmem>>, vector<512x128xf32>,
    return
  }
  func.func @transform_0(%arg0: i32) -> (i32, i32) {
    %c0_i32 = arith.constant 0 : i32
    %c0_i32_0 = arith.constant 0 : i32
    return %arg0, %c0_i32 : i32, i32
  }
  func.func @transform_1(%arg0: i32) -> (i32, i32) {
    %c0_i32 = arith.constant 0 : i32
    %c0_i32_0 = arith.constant 0 : i32
    %c0_i32_1 = arith.constant 0 : i32
    return %c0_i32, %c0_i32_0 : i32, i32
  }
  func.func @transform_2(%arg0: i32) -> (i32, i32, i32) {
    %c0_i32 = arith.constant 0 : i32
    %c0_i32_0 = arith.constant 0 : i32
    %c0_i32_1 = arith.constant 0 : i32
    %c0_i32_2 = arith.constant 0 : i32
    return %c0_i32, %c0_i32_0, %c0_i32_1 : i32, i32, i32
  }
  func.func @transform_3(%arg0: i32) -> (i32, i32, i32) {
    %c0_i32 = arith.constant 0 : i32
    %c0_i32_0 = arith.constant 0 : i32
    %c0_i32_1 = arith.constant 0 : i32
    %c0_i32_2 = arith.constant 0 : i32
    return %c0_i32, %c0_i32_0, %c0_i32_1 : i32, i32, i32
  }
  func.func @transform_4(%arg0: i32) -> (i32, i32) {
    %c0_i32 = arith.constant 0 : i32
    %c0_i32_0 = arith.constant 0 : i32
    return %arg0, %c0_i32 : i32, i32
  }
}

</mosaic_0001>

<bundles_post_ra>
// kernel: autoencoder_forward.1
= control target key start
LH: loop header
LB: loop body
LE: loop exit
PB: predicated region body
PF: predicated region fallthrough
CT: control target
= control target key end

     0   :  { %s3675_s15 = smov 0   ;;  %s4311_s0 = inlined_call_operand.vmem [shape: bf16[1024,64], index: 0, kind: input, shape index: {}]   ;;  %s4312_s1 = inlined_call_operand.vmem [shape: bf16[64,128], index: 1, kind: input, shape index: {}]   ;;  %s4313_s2 = inlined_call_operand.vmem [shape: bf16[4,128,128], index: 2, kind: input, shape index: {}]   ;;  %s4314_s3 = inlined_call_operand.vmem [shape: f32[5,1,128], index: 3, kind: input, shape index: {}]   ;;  %s4315_s4 = inlined_call_operand.vmem [shape: f32[1024,128], index: 4, kind: output, shape index: {}]  }
   0x1 LB: > { %s2802_s16 = sadd.s32 4294967295, %s3648_s15   ;;  %p2806_p0 = scmp.ge.s32.totalorder %s3648_s15, 1  ;;  %s3648_s15 = sphi %s3675_s15, %s14_s15  }
   0x2   : > { %p163_p1 = scmp.lt.s32.totalorder %s3648_s15, 3 }
   0x4   : > { %p164_p2 = pnand %p2806_p0, %p163_p1 }
   0x5   : > { %v3574_v0 = vld [vmem:[%s4312_s1] sm:$0xff] (!%p164_p2)   ;;  %s2807_s19 = sshll.u32 (!%p164_p2), %s2802_s16, 6  ;;  %v3575_v1 = vld [vmem:[%s4312_s1 + $0x8] sm:$0xff] (!%p164_p2)   ;;  %v3576_v2 = vld [vmem:[%s4312_s1 + $0x10] sm:$0xff] (!%p164_p2)   ;;  %vm465_vm0 = vcmask (!%p164_p2), 523264  }
   0x6   : > { %167 = sbr.rel (%p164_p2) target bundleno = 1248 (0x4e0), region = 36  ;;  %p190_p3 = scmp.lt.s32.totalorder (!%p164_p2), %s2807_s19, 127  ;;  %3166 = vmatprep.subr.bf16.mxu0 (!%p164_p2), %v3574_v0  ;;  %3558 = vmatprep.subr.bf16.mxu1 (!%p164_p2), %v3574_v0  ;;  %v3577_v4 = vld [vmem:[%s4312_s1 + $0x18] sm:$0xff] (!%p164_p2)   ;;  %v3610_v5 = vld [vmem:[%s4313_s2] sm:$0xff] (!%p164_p2)   ;;  %v3611_v11 = vld [vmem:[%s4313_s2 + $0x8] sm:$0xff] (!%p164_p2)  }
   0x7   : > { %3167 = vmatpush3.bf16.msra.mxu0 (!%p164_p2), %v3574_v0  ;;  %3562 = vmatpush3.bf16.msra.mxu1 (!%p164_p2), %v3574_v0  ;;  %v3612_v14 = vld [vmem:[%s4313_s2 + $0x10] sm:$0xff] (!%p164_p2)   ;;  %v3613_v23 = vld [vmem:[%s4313_s2 + $0x18] sm:$0xff] (!%p164_p2)   ;;  %v3614_v24 = vld [vmem:[%s4313_s2 + $0x20] sm:$0xff] (!%p164_p2)  }
   0x8   : > { %3168 = vmatprep.subr.bf16.mxu0 (!%p164_p2), %v3575_v1  ;;  %3559 = vmatprep.subr.bf16.mxu1 (!%p164_p2), %v3575_v1  ;;  %v3615_v25 = vld [vmem:[%s4313_s2 + $0x28] sm:$0xff] (!%p164_p2)   ;;  %v3616_v30 = vld [vmem:[%s4313_s2 + $0x30] sm:$0xff] (!%p164_p2)   ;;  %v3617_v43 = vld [vmem:[%s4313_s2 + $0x38] sm:$0xff] (!%p164_p2)  }
   0x9   : > { %v3794_v44 = vld [vmem:[%s4314_s3] ss:$0 sm:$0xff] (!%p164_p2)  ;;  %v3619_v53 = vld [vmem:[%s4313_s2 + $0x48] sm:$0xff] (!%p164_p2)   ;;  %v3620_v60 = vld [vmem:[%s4313_s2 + $0x50] sm:$0xff] (!%p164_p2)  }
   0xa   : > { %v3618_v52 = vld [vmem:[%s4313_s2 + $0x40] sm:$0xff] (!%p164_p2)  }
   0xb   : > { %3169 = vmatpush3.bf16.msra.mxu0 (!%p164_p2), %v3575_v1  ;;  %3563 = vmatpush3.bf16.msra.mxu1 (!%p164_p2), %v3575_v1 }
   0xc   : > { %3170 = vmatprep.subr.bf16.mxu0 (!%p164_p2), %v3576_v2  ;;  %3560 = vmatprep.subr.bf16.mxu1 (!%p164_p2), %v3576_v2 }
   0xd   : > { %s4317_s19 = smov (!%p190_p3, %s2807_s19), 127 }
   0xe   : > { %s2808_s24 = sshll.u32 %s4317_s19, 2  ;;  %s2810_s30 = sshll.u32 %s4317_s19, 3 }
   0xf   : > { %s3698_s27 = scalar_lea.vmem %s4311_s0, %s2808_s24  ;;  %3171 = vmatpush3.bf16.msra.mxu0 %v3576_v2  ;;  %3564 = vmatpush3.bf16.msra.mxu1 %v3576_v2  ;;  %s4178_s9 = scalar_lea.vmem %s4315_s4, %s2810_s30 }
  0x10   : > { %v3578_v3 = vld [vmem:[%s3698_s27] sm:$0xff]   ;;  %3172 = vmatprep.subr.bf16.mxu0 %v3577_v4  ;;  %3561 = vmatprep.subr.bf16.mxu1 %v3577_v4  ;;  %v3579_v6 = vld [vmem:[%s3698_s27 + $0x8] sm:$0xff]   ;;  %v3580_v7 = vld [vmem:[%s3698_s27 + $0x10] sm:$0xff]  }
  0x11   : > { %3174 = vmatprep.mubr.msk.bf16.mxu0 %vm465_vm0, %v3578_v3  ;;  %v3581_v8 = vld [vmem:[%s3698_s27 + $0x18] sm:$0xff]   ;;  %v3582_v9 = vld [vmem:[%s3698_s27 + $0x20] sm:$0xff]   ;;  %v3595_v12 = vld [vmem:[%s3698_s27 + $0x88] sm:$0xff]  }
  0x12   : > { %v3594_v10 = vld [vmem:[%s3698_s27 + $0x80] sm:$0xff]   ;;  %v3596_v13 = vld [vmem:[%s3698_s27 + $0x90] sm:$0xff]   ;;  %v3583_v15 = vld [vmem:[%s3698_s27 + $0x28] sm:$0xff]  }
  0x13   : > { %3173 = vmatpush3.bf16.msra.mxu0 %v3577_v4  ;;  %3565 = vmatpush3.bf16.msra.mxu1 %v3577_v4  ;;  %v3584_v16 = vld [vmem:[%s3698_s27 + $0x30] sm:$0xff]   ;;  %v3597_v17 = vld [vmem:[%s3698_s27 + $0x98] sm:$0xff]   ;;  %v3598_v18 = vld [vmem:[%s3698_s27 + $0xa0] sm:$0xff]  }
  0x14   : > { %3238 = vmatprep.subr.bf16.mxu1 %v3610_v5  ;;  %3206 = vmatprep.mubr.msk.bf16.mxu1 %vm465_vm0, %v3594_v10  ;;  %v3585_v19 = vld [vmem:[%s3698_s27 + $0x38] sm:$0xff]   ;;  %v3586_v20 = vld [vmem:[%s3698_s27 + $0x40] sm:$0xff]   ;;  %v3599_v21 = vld [vmem:[%s3698_s27 + $0xa8] sm:$0xff]  }
  0x15   : > { %v3600_v22 = vld [vmem:[%s3698_s27 + $0xb0] sm:$0xff]   ;;  %v3587_v26 = vld [vmem:[%s3698_s27 + $0x48] sm:$0xff]   ;;  %v3601_v27 = vld [vmem:[%s3698_s27 + $0xb8] sm:$0xff]   ;;  %3318 = vmatprep.subr.bf16.mxu0 %v3618_v52 }
  0x16   : > { %3175 = vmatmul.mubr.msk.bf16.vlgmr.msra.gmra.mrb[0].mxu0 %vm465_vm0, %v3579_v6  ;;  %3207 = vmatmul.mubr.msk.bf16.vlgmr.msra.gmra.mrb[0].mxu1 %vm465_vm0, %v3595_v12  ;;  %v3588_v28 = vld [vmem:[%s3698_s27 + $0x50] sm:$0xff]   ;;  %v3602_v29 = vld [vmem:[%s3698_s27 + $0xc0] sm:$0xff]   ;;  %v3589_v31 = vld [vmem:[%s3698_s27 + $0x58] sm:$0xff]  }
  0x17   : > { %3178 = vmatprep.mubr.msk.bf16.mxu0 %vm465_vm0, %v3580_v7  ;;  %3210 = vmatprep.mubr.msk.bf16.mxu1 %vm465_vm0, %v3596_v13  ;;  %v3603_v32 = vld [vmem:[%s3698_s27 + $0xc8] sm:$0xff]   ;;  %v3590_v33 = vld [vmem:[%s3698_s27 + $0x60] sm:$0xff]   ;;  %v3604_v34 = vld [vmem:[%s3698_s27 + $0xd0] sm:$0xff]  }
  0x18   : > { %3239 = vmatpush3.bf16.msra.mxu1 %v3610_v5  ;;  %v3591_v35 = vld [vmem:[%s3698_s27 + $0x68] sm:$0xff]   ;;  %v3605_v36 = vld [vmem:[%s3698_s27 + $0xd8] sm:$0xff]   ;;  %v3592_v37 = vld [vmem:[%s3698_s27 + $0x70] sm:$0xff]   ;;  %3319 = vmatpush3.bf16.msra.mxu0 %v3618_v52 }
  0x19   : > { %3240 = vmatprep.subr.bf16.mxu1 %v3611_v11  ;;  %v3606_v38 = vld [vmem:[%s3698_s27 + $0xe0] sm:$0xff]   ;;  %v3593_v39 = vld [vmem:[%s3698_s27 + $0x78] sm:$0xff]   ;;  %v3607_v40 = vld [vmem:[%s3698_s27 + $0xe8] sm:$0xff]   ;;  %3320 = vmatprep.subr.bf16.mxu0 %v3619_v53 }
  0x1a   : > { %v3608_v41 = vld [vmem:[%s3698_s27 + $0xf0] sm:$0xff]   ;;  %v3609_v42 = vld [vmem:[%s3698_s27 + $0xf8] sm:$0xff]  }
  0x1b   : > { %v3621_v13 = vld [vmem:[%s4313_s2 + $0x58] sm:$0xff]  }
  0x1c   : > { %3241 = vmatpush3.bf16.msra.mxu1 %v3611_v11  ;;  %3321 = vmatpush3.bf16.msra.mxu0 %v3619_v53 }
  0x1d   : > { %3242 = vmatprep.subr.bf16.mxu1 %v3612_v14  ;;  %3322 = vmatprep.subr.bf16.mxu0 %v3620_v60 }
  0x1e   : > { %3179 = vmatmul.mubr.msk.bf16.gmra.mrb[4].mxu0 %vm465_vm0, %v3581_v8  ;;  %3211 = vmatmul.mubr.msk.bf16.gmra.mrb[4].mxu1 %vm465_vm0, %v3597_v17 }
  0x1f   : > { %3182 = vmatprep.mubr.msk.bf16.mxu0 %vm465_vm0, %v3582_v9  ;;  %3214 = vmatprep.mubr.msk.bf16.mxu1 %vm465_vm0, %v3598_v18 }
  0x20   : > { %3243 = vmatpush3.bf16.msra.mxu1 %v3612_v14  ;;  %3323 = vmatpush3.bf16.msra.mxu0 %v3620_v60 }
  0x21   : > { %3244 = vmatprep.subr.bf16.mxu1 %v3613_v23  ;;  %3324 = vmatprep.subr.bf16.mxu0 %v3621_v13 }
  0x24   : > { %3245 = vmatpush3.bf16.msra.mxu1 %v3613_v23  ;;  %3325 = vmatpush3.bf16.msra.mxu0 %v3621_v13 }
  0x25   : > { %3246 = vmatprep.subr.bf16.mxu1 %v3614_v24 }
  0x26   : > { %3183 = vmatmul.mubr.msk.bf16.gmra.mrb[8].mxu0 %vm465_vm0, %v3583_v15  ;;  %3215 = vmatmul.mubr.msk.bf16.gmra.mrb[8].mxu1 %vm465_vm0, %v3599_v21 }
  0x27   : > { %3186 = vmatprep.mubr.msk.bf16.mxu0 %vm465_vm0, %v3584_v16  ;;  %3218 = vmatprep.mubr.msk.bf16.mxu1 %vm465_vm0, %v3600_v22 }
  0x28   : > { %3247 = vmatpush3.bf16.msra.mxu1 %v3614_v24 }
  0x29   : > { %3248 = vmatprep.subr.bf16.mxu1 %v3615_v25 }
  0x2c   : > { %3249 = vmatpush3.bf16.msra.mxu1 %v3615_v25  ;;  %v3622_v25 = vld [vmem:[%s4313_s2 + $0x60] sm:$0xff]  }
  0x2d   : > { %3250 = vmatprep.subr.bf16.mxu1 %v3616_v30  ;;  %3326 = vmatprep.subr.bf16.mxu0 %v3622_v25 }
  0x2e   : > { %3187 = vmatmul.mubr.msk.bf16.gmra.mrb[12].mxu0 %vm465_vm0, %v3585_v19  ;;  %3219 = vmatmul.mubr.msk.bf16.gmra.mrb[12].mxu1 %vm465_vm0, %v3601_v27 }
  0x2f   : > { %3190 = vmatprep.mubr.msk.bf16.mxu0 %vm465_vm0, %v3586_v20  ;;  %3222 = vmatprep.mubr.msk.bf16.mxu1 %vm465_vm0, %v3602_v29 }
  0x30   : > { %3251 = vmatpush3.bf16.msra.mxu1 %v3616_v30  ;;  %3327 = vmatpush3.bf16.msra.mxu0 %v3622_v25 }
  0x31   : > { %3252 = vmatprep.subr.bf16.mxu1 %v3617_v43 }
  0x34   : > { %3253 = vmatpush3.bf16.msra.mxu1 %v3617_v43  ;;  %v3623_v43 = vld [vmem:[%s4313_s2 + $0x68] sm:$0xff]  }
  0x35   : > { %3328 = vmatprep.subr.bf16.mxu0 %v3623_v43 }
  0x36   : > { %3191 = vmatmul.mubr.msk.bf16.gmra.mrb[16].mxu0 %vm465_vm0, %v3587_v26  ;;  %3223 = vmatmul.mubr.msk.bf16.gmra.mrb[16].mxu1 %vm465_vm0, %v3603_v32 }
  0x37   : > { %3194 = vmatprep.mubr.msk.bf16.mxu0 %vm465_vm0, %v3588_v28  ;;  %3226 = vmatprep.mubr.msk.bf16.mxu1 %vm465_vm0, %v3604_v34 }
  0x38   : > { %3329 = vmatpush3.bf16.msra.mxu0 %v3623_v43 }
  0x3e   : > { %3195 = vmatmul.mubr.msk.bf16.gmra.mrb[20].mxu0 %vm465_vm0, %v3589_v31  ;;  %3227 = vmatmul.mubr.msk.bf16.gmra.mrb[20].mxu1 %vm465_vm0, %v3605_v36 }
  0x3f   : > { %3198 = vmatprep.mubr.msk.bf16.mxu0 %vm465_vm0, %v3590_v33  ;;  %3230 = vmatprep.mubr.msk.bf16.mxu1 %vm465_vm0, %v3606_v38 }
  0x46   : > { %3199 = vmatmul.mubr.msk.bf16.gmra.mrb[24].mxu0 %vm465_vm0, %v3591_v35  ;;  %3231 = vmatmul.mubr.msk.bf16.gmra.mrb[24].mxu1 %vm465_vm0, %v3607_v40 }
  0x47   : > { %3202 = vmatprep.mubr.msk.bf16.mxu0 %vm465_vm0, %v3592_v37  ;;  %3234 = vmatprep.mubr.msk.bf16.mxu1 %vm465_vm0, %v3608_v41 }
  0x4e   : > { %3203 = vmatmul.mubr.msk.bf16.gmra.mrb[28].mxu0 %vm465_vm0, %v3593_v39  ;;  %3235 = vmatmul.mubr.msk.bf16.gmra.mrb[28].mxu1 %vm465_vm0, %v3609_v42 }
  0xe9   : > { %v3176_v45 = vpop.f32.mrb[0].mxu0  ;;  %v3208_v63 = vpop.f32.mrb[0].mxu1 }
  0xea   : > { %v605_v46 = vadd.f32 %v3176_v45, %v3794_v44  ;;  %v596_v47 = vpop.f32.mrb[1].mxu0  ;;  %v733_v2 = vadd.f32 %v3208_v63, %v3794_v44  ;;  %v724_v3 = vpop.f32.mrb[1].mxu1 }
  0xeb   : > { %v597_v48 = vadd.f32 %v3794_v44, %v596_v47  ;;  %v3177_v49 = vpop.f32.mrb[2].mxu0  ;;  %v725_v6 = vadd.f32 %v3794_v44, %v724_v3  ;;  %v3209_v7 = vpop.f32.mrb[2].mxu1 }
  0xec   : > { %v608_v50 = vadd.f32 %v3177_v49, %v3794_v44  ;;  %v599_v51 = vpop.f32.mrb[3].mxu0  ;;  %v853_v55 = vmax.f32 %v605_v46, 0.0  ;;  %v885_v10 = vmax.f32 %v733_v2, 0.0  ;;  %v736_v11 = vadd.f32 %v3209_v7, %v3794_v44  ;;  %v727_v12 = vpop.f32.mrb[3].mxu1 }
  0xed   : > { %v600_v54 = vadd.f32 %v3794_v44, %v599_v51  ;;  %v851_v57 = vmax.f32 %v597_v48, 0.0  ;;  %v883_v15 = vmax.f32 %v725_v6, 0.0  ;;  %v728_v16 = vadd.f32 %v3794_v44, %v727_v12 }
  0xee   : > { %v854_v56 = vmax.f32 %v608_v50, 0.0  ;;  %v886_v19 = vmax.f32 %v736_v11, 0.0 }
  0xef   : > { %v852_v58 = vmax.f32 %v600_v54, 0.0  ;;  %v884_v22 = vmax.f32 %v728_v16, 0.0 }
  0xf0   : > { %v916_v59 = vpack.c.bf16 %v854_v56, %v853_v55  ;;  %v3820_v24 = vpack.c.bf16 %v886_v19, %v885_v10  ;;  %v3624_v56 = vld [vmem:[%s4313_s2 + $0x70] sm:$0xff]  }
  0xf1   : > { %v915_v61 = vpack.c.bf16 %v852_v58, %v851_v57  ;;  %v3180_v62 = vpop.f32.mrb[4].mxu0  ;;  %v3825_v28 = vpack.c.bf16 %v884_v22, %v883_v15  ;;  %v3212_v29 = vpop.f32.mrb[4].mxu1  ;;  %3330 = vmatprep.subr.bf16.mxu0 %v3624_v56 }
  0xf2   : > { %v621_v0 = vadd.f32 %v3180_v62, %v3794_v44  ;;  %v612_v1 = vpop.f32.mrb[5].mxu0  ;;  %v749_v32 = vadd.f32 %v3212_v29, %v3794_v44  ;;  %v740_v33 = vpop.f32.mrb[5].mxu1  ;;  %3331 = vmatpush3.bf16.msra.mxu0 %v3624_v56 }
  0xf3   : > { %v613_v4 = vadd.f32 %v3794_v44, %v612_v1  ;;  %v3181_v5 = vpop.f32.mrb[6].mxu0  ;;  %3254 = vmatprep.mubr.bf16.mxu1 %v915_v61  ;;  %v741_v36 = vadd.f32 %v3794_v44, %v740_v33  ;;  %v3213_v37 = vpop.f32.mrb[6].mxu1 }
  0xf4   : > { %v624_v8 = vadd.f32 %v3181_v5, %v3794_v44  ;;  %v615_v9 = vpop.f32.mrb[7].mxu0  ;;  %3255 = vmatmul.mubr.bf16.vlgmr.msra.gmra.mrb[32].mxu1 %v916_v59  ;;  %v857_v17 = vmax.f32 %v621_v0, 0.0  ;;  %v889_v40 = vmax.f32 %v749_v32, 0.0  ;;  %v752_v41 = vadd.f32 %v3213_v37, %v3794_v44  ;;  %v743_v42 = vpop.f32.mrb[7].mxu1 }
  0xf5   : > { %v616_v14 = vadd.f32 %v3794_v44, %v615_v9  ;;  %v855_v20 = vmax.f32 %v613_v4, 0.0  ;;  %v887_v46 = vmax.f32 %v741_v36, 0.0  ;;  %v744_v47 = vadd.f32 %v3794_v44, %v743_v42 }
  0xf6   : > { %v858_v18 = vmax.f32 %v624_v8, 0.0  ;;  %v890_v50 = vmax.f32 %v752_v41, 0.0 }
  0xf7   : > { %v856_v21 = vmax.f32 %v616_v14, 0.0  ;;  %v888_v53 = vmax.f32 %v744_v47, 0.0 }
  0xf8   : > { %v918_v23 = vpack.c.bf16 %v858_v18, %v857_v17  ;;  %v3838_v55 = vpack.c.bf16 %v890_v50, %v889_v40 }
  0xf9   : > { %v917_v26 = vpack.c.bf16 %v856_v21, %v855_v20  ;;  %v3184_v27 = vpop.f32.mrb[8].mxu0  ;;  %v3843_v59 = vpack.c.bf16 %v888_v53, %v887_v46  ;;  %v3216_v60 = vpop.f32.mrb[8].mxu1 }
  0xfa   : > { %v637_v30 = vadd.f32 %v3184_v27, %v3794_v44  ;;  %v628_v31 = vpop.f32.mrb[9].mxu0  ;;  %v765_v63 = vadd.f32 %v3216_v60, %v3794_v44  ;;  %v756_v0 = vpop.f32.mrb[9].mxu1 }
  0xfb   : > { %v629_v34 = vadd.f32 %v3794_v44, %v628_v31  ;;  %v3185_v35 = vpop.f32.mrb[10].mxu0  ;;  %3258 = vmatprep.mubr.bf16.mxu1 %v917_v26  ;;  %v757_v3 = vadd.f32 %v3794_v44, %v756_v0  ;;  %v3217_v4 = vpop.f32.mrb[10].mxu1 }
  0xfc   : > { %v640_v38 = vadd.f32 %v3185_v35, %v3794_v44  ;;  %v631_v39 = vpop.f32.mrb[11].mxu0  ;;  %3259 = vmatmul.mubr.bf16.gmra.mrb[36].mxu1 %v918_v23  ;;  %v861_v48 = vmax.f32 %v637_v30, 0.0  ;;  %v893_v7 = vmax.f32 %v765_v63, 0.0  ;;  %v768_v8 = vadd.f32 %v3217_v4, %v3794_v44  ;;  %v759_v9 = vpop.f32.mrb[11].mxu1 }
  0xfd   : > { %v632_v45 = vadd.f32 %v3794_v44, %v631_v39  ;;  %v859_v51 = vmax.f32 %v629_v34, 0.0  ;;  %v891_v11 = vmax.f32 %v757_v3, 0.0  ;;  %v760_v12 = vadd.f32 %v3794_v44, %v759_v9 }
  0xfe   : > { %v862_v49 = vmax.f32 %v640_v38, 0.0  ;;  %v894_v15 = vmax.f32 %v768_v8, 0.0 }
  0xff   : > { %v860_v52 = vmax.f32 %v632_v45, 0.0  ;;  %v892_v18 = vmax.f32 %v760_v12, 0.0 }
 0x100   : > { %v920_v54 = vpack.c.bf16 %v862_v49, %v861_v48  ;;  %v3853_v20 = vpack.c.bf16 %v894_v15, %v893_v7 }
 0x101   : > { %v919_v57 = vpack.c.bf16 %v860_v52, %v859_v51  ;;  %v3188_v58 = vpop.f32.mrb[12].mxu0  ;;  %v3855_v23 = vpack.c.bf16 %v892_v18, %v891_v11  ;;  %v3220_v25 = vpop.f32.mrb[12].mxu1 }
 0x102   : > { %v653_v61 = vadd.f32 %v3188_v58, %v3794_v44  ;;  %v644_v62 = vpop.f32.mrb[13].mxu0  ;;  %v781_v29 = vadd.f32 %v3220_v25, %v3794_v44  ;;  %v772_v30 = vpop.f32.mrb[13].mxu1 }
 0x103   : > { %v645_v1 = vadd.f32 %v3794_v44, %v644_v62  ;;  %v3189_v2 = vpop.f32.mrb[14].mxu0  ;;  %3262 = vmatprep.mubr.bf16.mxu1 %v919_v57  ;;  %v773_v33 = vadd.f32 %v3794_v44, %v772_v30  ;;  %v3221_v34 = vpop.f32.mrb[14].mxu1 }
 0x104   : > { %v656_v5 = vadd.f32 %v3189_v2, %v3794_v44  ;;  %v647_v6 = vpop.f32.mrb[15].mxu0  ;;  %3263 = vmatmul.mubr.bf16.gmra.mrb[40].mxu1 %v920_v54  ;;  %v865_v13 = vmax.f32 %v653_v61, 0.0  ;;  %v897_v37 = vmax.f32 %v781_v29, 0.0  ;;  %v784_v38 = vadd.f32 %v3221_v34, %v3794_v44  ;;  %v775_v39 = vpop.f32.mrb[15].mxu1 }
 0x105   : > { %v648_v10 = vadd.f32 %v3794_v44, %v647_v6  ;;  %v863_v16 = vmax.f32 %v645_v1, 0.0  ;;  %v895_v41 = vmax.f32 %v773_v33, 0.0  ;;  %v776_v42 = vadd.f32 %v3794_v44, %v775_v39 }
 0x106   : > { %v866_v14 = vmax.f32 %v656_v5, 0.0  ;;  %v898_v46 = vmax.f32 %v784_v38, 0.0 }
 0x107   : > { %v864_v17 = vmax.f32 %v648_v10, 0.0  ;;  %v896_v49 = vmax.f32 %v776_v42, 0.0 }
 0x108   : > { %v922_v19 = vpack.c.bf16 %v866_v14, %v865_v13  ;;  %v3865_v51 = vpack.c.bf16 %v898_v46, %v897_v37 }
 0x109   : > { %v921_v21 = vpack.c.bf16 %v864_v17, %v863_v16  ;;  %v3192_v22 = vpop.f32.mrb[16].mxu0  ;;  %v3867_v54 = vpack.c.bf16 %v896_v49, %v895_v41  ;;  %v3224_v56 = vpop.f32.mrb[16].mxu1 }
 0x10a   : > { %v669_v26 = vadd.f32 %v3192_v22, %v3794_v44  ;;  %v660_v27 = vpop.f32.mrb[17].mxu0  ;;  %v797_v60 = vadd.f32 %v3224_v56, %v3794_v44  ;;  %v788_v61 = vpop.f32.mrb[17].mxu1 }
 0x10b   : > { %v661_v31 = vadd.f32 %v3794_v44, %v660_v27  ;;  %v3193_v32 = vpop.f32.mrb[18].mxu0  ;;  %3266 = vmatprep.mubr.bf16.mxu1 %v921_v21  ;;  %v789_v0 = vadd.f32 %v3794_v44, %v788_v61  ;;  %v3225_v1 = vpop.f32.mrb[18].mxu1 }
 0x10c   : > { %v672_v35 = vadd.f32 %v3193_v32, %v3794_v44  ;;  %v663_v36 = vpop.f32.mrb[19].mxu0  ;;  %3267 = vmatmul.mubr.bf16.gmra.mrb[44].mxu1 %v922_v19  ;;  %v869_v43 = vmax.f32 %v669_v26, 0.0  ;;  %v901_v4 = vmax.f32 %v797_v60, 0.0  ;;  %v800_v5 = vadd.f32 %v3225_v1, %v3794_v44  ;;  %v791_v6 = vpop.f32.mrb[19].mxu1 }
 0x10d   : > { %v664_v40 = vadd.f32 %v3794_v44, %v663_v36  ;;  %v867_v47 = vmax.f32 %v661_v31, 0.0  ;;  %v899_v8 = vmax.f32 %v789_v0, 0.0  ;;  %v792_v9 = vadd.f32 %v3794_v44, %v791_v6 }
 0x10e   : > { %v870_v45 = vmax.f32 %v672_v35, 0.0  ;;  %v902_v12 = vmax.f32 %v800_v5, 0.0 }
 0x10f   : > { %v868_v48 = vmax.f32 %v664_v40, 0.0  ;;  %v900_v15 = vmax.f32 %v792_v9, 0.0 }
 0x110   : > { %v924_v50 = vpack.c.bf16 %v870_v45, %v869_v43  ;;  %v3877_v17 = vpack.c.bf16 %v902_v12, %v901_v4 }
 0x111   : > { %v923_v52 = vpack.c.bf16 %v868_v48, %v867_v47  ;;  %v3196_v53 = vpop.f32.mrb[20].mxu0  ;;  %v3879_v21 = vpack.c.bf16 %v900_v15, %v899_v8  ;;  %v3228_v22 = vpop.f32.mrb[20].mxu1 }
 0x112   : > { %v685_v57 = vadd.f32 %v3196_v53, %v3794_v44  ;;  %v676_v58 = vpop.f32.mrb[21].mxu0  ;;  %v813_v27 = vadd.f32 %v3228_v22, %v3794_v44  ;;  %v804_v29 = vpop.f32.mrb[21].mxu1 }
 0x113   : > { %v677_v62 = vadd.f32 %v3794_v44, %v676_v58  ;;  %v3197_v63 = vpop.f32.mrb[22].mxu0  ;;  %3270 = vmatprep.mubr.bf16.mxu1 %v923_v52  ;;  %v805_v32 = vadd.f32 %v3794_v44, %v804_v29  ;;  %v3229_v33 = vpop.f32.mrb[22].mxu1 }
 0x114   : > { %v688_v2 = vadd.f32 %v3197_v63, %v3794_v44  ;;  %v679_v3 = vpop.f32.mrb[23].mxu0  ;;  %3271 = vmatmul.mubr.bf16.gmra.mrb[48].mxu1 %v924_v50  ;;  %v873_v10 = vmax.f32 %v685_v57, 0.0  ;;  %v905_v36 = vmax.f32 %v813_v27, 0.0  ;;  %v816_v37 = vadd.f32 %v3229_v33, %v3794_v44  ;;  %v807_v38 = vpop.f32.mrb[23].mxu1 }
 0x115   : > { %v680_v7 = vadd.f32 %v3794_v44, %v679_v3  ;;  %v871_v13 = vmax.f32 %v677_v62, 0.0  ;;  %v903_v40 = vmax.f32 %v805_v32, 0.0  ;;  %v808_v41 = vadd.f32 %v3794_v44, %v807_v38 }
 0x116   : > { %v874_v11 = vmax.f32 %v688_v2, 0.0  ;;  %v906_v45 = vmax.f32 %v816_v37, 0.0 }
 0x117   : > { %v872_v14 = vmax.f32 %v680_v7, 0.0  ;;  %v904_v48 = vmax.f32 %v808_v41, 0.0  ;;  %v3628_v41 = vld [vmem:[%s4313_s2 + $0x90] sm:$0xff]  }
 0x118   : > { %v926_v16 = vpack.c.bf16 %v874_v11, %v873_v10  ;;  %v942_v50 = vpack.c.bf16 %v906_v45, %v905_v36 }
 0x119   : > { %v925_v18 = vpack.c.bf16 %v872_v14, %v871_v13  ;;  %v3200_v19 = vpop.f32.mrb[24].mxu0  ;;  %v941_v56 = vpack.c.bf16 %v904_v48, %v903_v40  ;;  %v3232_v57 = vpop.f32.mrb[24].mxu1 }
 0x11a   : > { %v701_v25 = vadd.f32 %v3200_v19, %v3794_v44  ;;  %v692_v26 = vpop.f32.mrb[25].mxu0  ;;  %v829_v61 = vadd.f32 %v3232_v57, %v3794_v44  ;;  %v820_v62 = vpop.f32.mrb[25].mxu1 }
 0x11b   : > { %v693_v30 = vadd.f32 %v3794_v44, %v692_v26  ;;  %v3201_v31 = vpop.f32.mrb[26].mxu0  ;;  %3274 = vmatprep.mubr.bf16.mxu1 %v925_v18  ;;  %v821_v1 = vadd.f32 %v3794_v44, %v820_v62  ;;  %v3233_v2 = vpop.f32.mrb[26].mxu1 }
 0x11c   : > { %v704_v34 = vadd.f32 %v3201_v31, %v3794_v44  ;;  %v695_v35 = vpop.f32.mrb[27].mxu0  ;;  %3275 = vmatmul.mubr.bf16.gmra.mrb[52].mxu1 %v926_v16  ;;  %v877_v42 = vmax.f32 %v701_v25, 0.0  ;;  %v909_v5 = vmax.f32 %v829_v61, 0.0  ;;  %v832_v6 = vadd.f32 %v3233_v2, %v3794_v44  ;;  %v823_v7 = vpop.f32.mrb[27].mxu1 }
 0x11d   : > { %v696_v39 = vadd.f32 %v3794_v44, %v695_v35  ;;  %v875_v46 = vmax.f32 %v693_v30, 0.0  ;;  %v907_v9 = vmax.f32 %v821_v1, 0.0  ;;  %v824_v10 = vadd.f32 %v3794_v44, %v823_v7 }
 0x11e   : > { %v878_v43 = vmax.f32 %v704_v34, 0.0  ;;  %v910_v13 = vmax.f32 %v832_v6, 0.0  ;;  %v3632_v6 = vld [vmem:[%s4313_s2 + $0xb0] sm:$0xff]  }
 0x11f   : > { %v876_v47 = vmax.f32 %v696_v39, 0.0  ;;  %v908_v16 = vmax.f32 %v824_v10, 0.0 }
 0x120   : > { %v928_v49 = vpack.c.bf16 %v878_v43, %v877_v42  ;;  %v944_v19 = vpack.c.bf16 %v910_v13, %v909_v5  ;;  %v3629_v42 = vld [vmem:[%s4313_s2 + $0x98] sm:$0xff]  }
 0x121   : > { %v927_v52 = vpack.c.bf16 %v876_v47, %v875_v46  ;;  %v3204_v53 = vpop.f32.mrb[28].mxu0  ;;  %v943_v25 = vpack.c.bf16 %v908_v16, %v907_v9  ;;  %v3236_v26 = vpop.f32.mrb[28].mxu1 }
 0x122   : > { %v717_v58 = vadd.f32 %v3204_v53, %v3794_v44  ;;  %v708_v60 = vpop.f32.mrb[29].mxu0  ;;  %v845_v27 = vadd.f32 %v3236_v26, %v3794_v44  ;;  %v836_v29 = vpop.f32.mrb[29].mxu1 }
 0x123   : > { %v709_v63 = vadd.f32 %v3794_v44, %v708_v60  ;;  %v3205_v0 = vpop.f32.mrb[30].mxu0  ;;  %3278 = vmatprep.mubr.bf16.mxu1 %v927_v52  ;;  %v837_v30 = vadd.f32 %v3794_v44, %v836_v29  ;;  %v3237_v31 = vpop.f32.mrb[30].mxu1 }
 0x124   : > { %v720_v3 = vadd.f32 %v3205_v0, %v3794_v44  ;;  %v711_v4 = vpop.f32.mrb[31].mxu0  ;;  %3279 = vmatmul.mubr.bf16.gmra.mrb[56].mxu1 %v928_v49  ;;  %v881_v11 = vmax.f32 %v717_v58, 0.0  ;;  %v913_v32 = vmax.f32 %v845_v27, 0.0  ;;  %v848_v33 = vadd.f32 %v3237_v31, %v3794_v44  ;;  %v839_v34 = vpop.f32.mrb[31].mxu1 }
 0x125   : > { %v712_v8 = vadd.f32 %v3794_v44, %v711_v4  ;;  %v879_v14 = vmax.f32 %v709_v63, 0.0  ;;  %v911_v35 = vmax.f32 %v837_v30, 0.0  ;;  %v840_v36 = vadd.f32 %v3794_v44, %v839_v34  ;;  %v3625_v44 = vld [vmem:[%s4313_s2 + $0x78] sm:$0xff]   ;;  %v3631_v63 = vld [vmem:[%s4313_s2 + $0xa8] sm:$0xff]  }
 0x126   : > { %v882_v12 = vmax.f32 %v720_v3, 0.0  ;;  %v914_v37 = vmax.f32 %v848_v33, 0.0  ;;  %3332 = vmatprep.subr.bf16.mxu0 %v3625_v44 }
 0x127   : > { %v880_v15 = vmax.f32 %v712_v8, 0.0  ;;  %v912_v38 = vmax.f32 %v840_v36, 0.0  ;;  %3333 = vmatpush3.bf16.msra.mxu0 %v3625_v44 }
 0x128   : > { %v930_v18 = vpack.c.bf16 %v882_v12, %v881_v11  ;;  %v946_v39 = vpack.c.bf16 %v914_v37, %v913_v32 }
 0x129   : > { %v929_v22 = vpack.c.bf16 %v880_v15, %v879_v14  ;;  %v945_v40 = vpack.c.bf16 %v912_v38, %v911_v35  ;;  %v3633_v15 = vld [vmem:[%s4313_s2 + $0xb8] sm:$0xff]  }
 0x12b   : > { %3282 = vmatprep.mubr.bf16.mxu1 %v929_v22 }
 0x12c   : > { %3283 = vmatmul.mubr.bf16.gmra.mrb[60].mxu1 %v930_v18 }
 0x12d   : > { %3286 = vmatprep.mubr.bf16.mxu1 %v3825_v28  ;;  %v3627_v28 = vld [vmem:[%s4313_s2 + $0x88] sm:$0xff]  }
 0x134   : > { %3287 = vmatmul.mubr.bf16.gmra.mrb[64].mxu1 %v3820_v24  ;;  %v3626_v24 = vld [vmem:[%s4313_s2 + $0x80] sm:$0xff]  }
 0x135   : > { %3290 = vmatprep.mubr.bf16.mxu1 %v3843_v59  ;;  %3398 = vmatprep.subr.bf16.mxu1 %v3626_v24 }
 0x136   : > { %3399 = vmatpush3.bf16.msra.mxu1 %v3626_v24 }
 0x137   : > { %3400 = vmatprep.subr.bf16.mxu1 %v3627_v28 }
 0x13a   : > { %3401 = vmatpush3.bf16.msra.mxu1 %v3627_v28 }
 0x13b   : > { %3402 = vmatprep.subr.bf16.mxu1 %v3628_v41 }
 0x13c   : > { %3291 = vmatmul.mubr.bf16.gmra.mrb[68].mxu1 %v3838_v55  ;;  %v3923_v55 = vld [vmem:[%s4314_s3 + $0x1] ss:$0 sm:$0xff] }
 0x13d   : > { %3294 = vmatprep.mubr.bf16.mxu1 %v3855_v23 }
 0x13e   : > { %3403 = vmatpush3.bf16.msra.mxu1 %v3628_v41 }
 0x13f   : > { %3404 = vmatprep.subr.bf16.mxu1 %v3629_v42 }
 0x142   : > { %3405 = vmatpush3.bf16.msra.mxu1 %v3629_v42 }
 0x144   : > { %3295 = vmatmul.mubr.bf16.gmra.mrb[72].mxu1 %v3853_v20 }
 0x145   : > { %3298 = vmatprep.mubr.bf16.mxu1 %v3867_v54 }
 0x14c   : > { %3299 = vmatmul.mubr.bf16.gmra.mrb[76].mxu1 %v3865_v51 }
 0x14d   : > { %3302 = vmatprep.mubr.bf16.mxu1 %v3879_v21 }
 0x154   : > { %3303 = vmatmul.mubr.bf16.gmra.mrb[80].mxu1 %v3877_v17 }
 0x155   : > { %3306 = vmatprep.mubr.bf16.mxu1 %v941_v56 }
 0x15c   : > { %3307 = vmatmul.mubr.bf16.gmra.mrb[84].mxu1 %v942_v50  ;;  %v3630_v50 = vld [vmem:[%s4313_s2 + $0xa0] sm:$0xff]  }
 0x15d   : > { %3310 = vmatprep.mubr.bf16.mxu1 %v943_v25  ;;  %3406 = vmatprep.subr.bf16.mxu1 %v3630_v50 }
 0x15e   : > { %3407 = vmatpush3.bf16.msra.mxu1 %v3630_v50 }
 0x15f   : > { %3408 = vmatprep.subr.bf16.mxu1 %v3631_v63 }
 0x162   : > { %3409 = vmatpush3.bf16.msra.mxu1 %v3631_v63 }
 0x163   : > { %3410 = vmatprep.subr.bf16.mxu1 %v3632_v6 }
 0x164   : > { %3311 = vmatmul.mubr.bf16.gmra.mrb[88].mxu1 %v944_v19 }
 0x165   : > { %3314 = vmatprep.mubr.bf16.mxu1 %v945_v40 }
 0x166   : > { %3411 = vmatpush3.bf16.msra.mxu1 %v3632_v6 }
 0x167   : > { %3412 = vmatprep.subr.bf16.mxu1 %v3633_v15 }
 0x16a   : > { %3413 = vmatpush3.bf16.msra.mxu1 %v3633_v15 }
 0x16c   : > { %3315 = vmatmul.mubr.bf16.gmra.mrb[92].mxu1 %v946_v39 }
 0x1c7   : > { %v3256_v59 = vpop.f32.mrb[32].mxu1 }
 0x1c8   : > { %v1062_v20 = vadd.f32 %v3256_v59, %v3923_v55  ;;  %v1053_v23 = vpop.f32.mrb[33].mxu1 }
 0x1c9   : > { %v1054_v51 = vadd.f32 %v3923_v55, %v1053_v23  ;;  %v3257_v54 = vpop.f32.mrb[34].mxu1 }
 0x1ca   : > { %v1065_v17 = vadd.f32 %v3257_v54, %v3923_v55  ;;  %v1056_v21 = vpop.f32.mrb[35].mxu1  ;;  %v1310_v45 = vmax.f32 %v1062_v20, 0.0 }
 0x1cb   : > { %v1057_v43 = vadd.f32 %v3923_v55, %v1056_v21  ;;  %v1308_v47 = vmax.f32 %v1054_v51, 0.0 }
 0x1cc   : > { %v1311_v46 = vmax.f32 %v1065_v17, 0.0 }
 0x1cd   : > { %v1309_v48 = vmax.f32 %v1057_v43, 0.0 }
 0x1ce   : > { %v1373_v49 = vpack.c.bf16 %v1311_v46, %v1310_v45 }
 0x1cf   : > { %v1372_v52 = vpack.c.bf16 %v1309_v48, %v1308_v47  ;;  %v3260_v53 = vpop.f32.mrb[36].mxu1 }
 0x1d0   : > { %v1078_v56 = vadd.f32 %v3260_v53, %v3923_v55  ;;  %v1069_v57 = vpop.f32.mrb[37].mxu1 }
 0x1d1   : > { %v1070_v58 = vadd.f32 %v3923_v55, %v1069_v57  ;;  %v3261_v60 = vpop.f32.mrb[38].mxu1  ;;  %3334 = vmatprep.mubr.bf16.mxu0 %v1372_v52 }
 0x1d2   : > { %v1081_v61 = vadd.f32 %v3261_v60, %v3923_v55  ;;  %v1072_v62 = vpop.f32.mrb[39].mxu1  ;;  %3335 = vmatmul.mubr.bf16.vlgmr.msra.gmra.mrb[32].mxu0 %v1373_v49  ;;  %v1314_v1 = vmax.f32 %v1078_v56, 0.0 }
 0x1d3   : > { %v1073_v0 = vadd.f32 %v3923_v55, %v1072_v62  ;;  %v1312_v3 = vmax.f32 %v1070_v58, 0.0 }
 0x1d4   : > { %v1315_v2 = vmax.f32 %v1081_v61, 0.0 }
 0x1d5   : > { %v1313_v4 = vmax.f32 %v1073_v0, 0.0 }
 0x1d6   : > { %v1375_v5 = vpack.c.bf16 %v1315_v2, %v1314_v1 }
 0x1d7   : > { %v1374_v7 = vpack.c.bf16 %v1313_v4, %v1312_v3  ;;  %v3264_v8 = vpop.f32.mrb[40].mxu1 }
 0x1d8   : > { %v1094_v9 = vadd.f32 %v3264_v8, %v3923_v55  ;;  %v1085_v10 = vpop.f32.mrb[41].mxu1 }
 0x1d9   : > { %v1086_v11 = vadd.f32 %v3923_v55, %v1085_v10  ;;  %v3265_v12 = vpop.f32.mrb[42].mxu1  ;;  %3338 = vmatprep.mubr.bf16.mxu0 %v1374_v7 }
 0x1da   : > { %v1097_v13 = vadd.f32 %v3265_v12, %v3923_v55  ;;  %v1088_v14 = vpop.f32.mrb[43].mxu1  ;;  %3339 = vmatmul.mubr.bf16.gmra.mrb[36].mxu0 %v1375_v5  ;;  %v1318_v18 = vmax.f32 %v1094_v9, 0.0 }
 0x1db   : > { %v1089_v16 = vadd.f32 %v3923_v55, %v1088_v14  ;;  %v1316_v22 = vmax.f32 %v1086_v11, 0.0 }
 0x1dc   : > { %v1319_v19 = vmax.f32 %v1097_v13, 0.0 }
 0x1dd   : > { %v1317_v25 = vmax.f32 %v1089_v16, 0.0 }
 0x1de   : > { %v1377_v26 = vpack.c.bf16 %v1319_v19, %v1318_v18 }
 0x1df   : > { %v1376_v27 = vpack.c.bf16 %v1317_v25, %v1316_v22  ;;  %v3268_v29 = vpop.f32.mrb[44].mxu1 }
 0x1e0   : > { %v1110_v30 = vadd.f32 %v3268_v29, %v3923_v55  ;;  %v1101_v31 = vpop.f32.mrb[45].mxu1 }
 0x1e1   : > { %v1102_v32 = vadd.f32 %v3923_v55, %v1101_v31  ;;  %v3269_v33 = vpop.f32.mrb[46].mxu1  ;;  %3342 = vmatprep.mubr.bf16.mxu0 %v1376_v27 }
 0x1e2   : > { %v1113_v34 = vadd.f32 %v3269_v33, %v3923_v55  ;;  %v1104_v35 = vpop.f32.mrb[47].mxu1  ;;  %3343 = vmatmul.mubr.bf16.gmra.mrb[40].mxu0 %v1377_v26  ;;  %v1322_v37 = vmax.f32 %v1110_v30, 0.0 }
 0x1e3   : > { %v1105_v36 = vadd.f32 %v3923_v55, %v1104_v35  ;;  %v1320_v39 = vmax.f32 %v1102_v32, 0.0 }
 0x1e4   : > { %v1323_v38 = vmax.f32 %v1113_v34, 0.0 }
 0x1e5   : > { %v1321_v40 = vmax.f32 %v1105_v36, 0.0 }
 0x1e6   : > { %v1379_v44 = vpack.c.bf16 %v1323_v38, %v1322_v37 }
 0x1e7   : > { %v1378_v24 = vpack.c.bf16 %v1321_v40, %v1320_v39  ;;  %v3272_v28 = vpop.f32.mrb[48].mxu1 }
 0x1e8   : > { %v1126_v59 = vadd.f32 %v3272_v28, %v3923_v55  ;;  %v1117_v20 = vpop.f32.mrb[49].mxu1 }
 0x1e9   : > { %v1118_v23 = vadd.f32 %v3923_v55, %v1117_v20  ;;  %v3273_v51 = vpop.f32.mrb[50].mxu1  ;;  %3346 = vmatprep.mubr.bf16.mxu0 %v1378_v24 }
 0x1ea   : > { %v1129_v54 = vadd.f32 %v3273_v51, %v3923_v55  ;;  %v1120_v17 = vpop.f32.mrb[51].mxu1  ;;  %3347 = vmatmul.mubr.bf16.gmra.mrb[44].mxu0 %v1379_v44  ;;  %v1326_v41 = vmax.f32 %v1126_v59, 0.0 }
 0x1eb   : > { %v1121_v21 = vadd.f32 %v3923_v55, %v1120_v17  ;;  %v1324_v43 = vmax.f32 %v1118_v23, 0.0 }
 0x1ec   : > { %v1327_v42 = vmax.f32 %v1129_v54, 0.0 }
 0x1ed   : > { %v1325_v45 = vmax.f32 %v1121_v21, 0.0 }
 0x1ee   : > { %v1381_v46 = vpack.c.bf16 %v1327_v42, %v1326_v41 }
 0x1ef   : > { %v1380_v47 = vpack.c.bf16 %v1325_v45, %v1324_v43  ;;  %v3276_v48 = vpop.f32.mrb[52].mxu1 }
 0x1f0   : > { %v1142_v49 = vadd.f32 %v3276_v48, %v3923_v55  ;;  %v1133_v50 = vpop.f32.mrb[53].mxu1 }
 0x1f1   : > { %v1134_v52 = vadd.f32 %v3923_v55, %v1133_v50  ;;  %v3277_v53 = vpop.f32.mrb[54].mxu1  ;;  %3350 = vmatprep.mubr.bf16.mxu0 %v1380_v47 }
 0x1f2   : > { %v1145_v56 = vadd.f32 %v3277_v53, %v3923_v55  ;;  %v1136_v57 = vpop.f32.mrb[55].mxu1  ;;  %3351 = vmatmul.mubr.bf16.gmra.mrb[48].mxu0 %v1381_v46  ;;  %v1330_v60 = vmax.f32 %v1142_v49, 0.0 }
 0x1f3   : > { %v1137_v58 = vadd.f32 %v3923_v55, %v1136_v57  ;;  %v1328_v62 = vmax.f32 %v1134_v52, 0.0 }
 0x1f4   : > { %v1331_v61 = vmax.f32 %v1145_v56, 0.0 }
 0x1f5   : > { %v1329_v63 = vmax.f32 %v1137_v58, 0.0 }
 0x1f6   : > { %v1383_v0 = vpack.c.bf16 %v1331_v61, %v1330_v60 }
 0x1f7   : > { %v1382_v1 = vpack.c.bf16 %v1329_v63, %v1328_v62  ;;  %v3280_v2 = vpop.f32.mrb[56].mxu1 }
 0x1f8   : > { %v1158_v3 = vadd.f32 %v3280_v2, %v3923_v55  ;;  %v1149_v4 = vpop.f32.mrb[57].mxu1 }
 0x1f9   : > { %v1150_v5 = vadd.f32 %v3923_v55, %v1149_v4  ;;  %v3281_v6 = vpop.f32.mrb[58].mxu1  ;;  %3354 = vmatprep.mubr.bf16.mxu0 %v1382_v1 }
 0x1fa   : > { %v1161_v7 = vadd.f32 %v3281_v6, %v3923_v55  ;;  %v1152_v8 = vpop.f32.mrb[59].mxu1  ;;  %3355 = vmatmul.mubr.bf16.gmra.mrb[52].mxu0 %v1383_v0  ;;  %v1334_v10 = vmax.f32 %v1158_v3, 0.0 }
 0x1fb   : > { %v1153_v9 = vadd.f32 %v3923_v55, %v1152_v8  ;;  %v1332_v12 = vmax.f32 %v1150_v5, 0.0 }
 0x1fc   : > { %v1335_v11 = vmax.f32 %v1161_v7, 0.0 }
 0x1fd   : > { %v1333_v13 = vmax.f32 %v1153_v9, 0.0 }
 0x1fe   : > { %v1385_v14 = vpack.c.bf16 %v1335_v11, %v1334_v10 }
 0x1ff   : > { %v1384_v15 = vpack.c.bf16 %v1333_v13, %v1332_v12  ;;  %v3284_v16 = vpop.f32.mrb[60].mxu1 }
 0x200   : > { %v1174_v18 = vadd.f32 %v3284_v16, %v3923_v55  ;;  %v1165_v19 = vpop.f32.mrb[61].mxu1 }
 0x201   : > { %v1166_v22 = vadd.f32 %v3923_v55, %v1165_v19  ;;  %v3285_v25 = vpop.f32.mrb[62].mxu1  ;;  %3358 = vmatprep.mubr.bf16.mxu0 %v1384_v15 }
 0x202   : > { %v1177_v26 = vadd.f32 %v3285_v25, %v3923_v55  ;;  %v1168_v27 = vpop.f32.mrb[63].mxu1  ;;  %3359 = vmatmul.mubr.bf16.gmra.mrb[56].mxu0 %v1385_v14  ;;  %v1338_v30 = vmax.f32 %v1174_v18, 0.0 }
 0x203   : > { %v1169_v29 = vadd.f32 %v3923_v55, %v1168_v27  ;;  %v1336_v32 = vmax.f32 %v1166_v22, 0.0 }
 0x204   : > { %v1339_v31 = vmax.f32 %v1177_v26, 0.0 }
 0x205   : > { %v1337_v33 = vmax.f32 %v1169_v29, 0.0 }
 0x206   : > { %v1387_v34 = vpack.c.bf16 %v1339_v31, %v1338_v30 }
 0x207   : > { %v1386_v35 = vpack.c.bf16 %v1337_v33, %v1336_v32  ;;  %v3288_v36 = vpop.f32.mrb[64].mxu1 }
 0x208   : > { %v1190_v37 = vadd.f32 %v3288_v36, %v3923_v55  ;;  %v1181_v38 = vpop.f32.mrb[65].mxu1 }
 0x209   : > { %v1182_v39 = vadd.f32 %v3923_v55, %v1181_v38  ;;  %v3289_v40 = vpop.f32.mrb[66].mxu1  ;;  %3362 = vmatprep.mubr.bf16.mxu0 %v1386_v35 }
 0x20a   : > { %v1193_v44 = vadd.f32 %v3289_v40, %v3923_v55  ;;  %v1184_v24 = vpop.f32.mrb[67].mxu1  ;;  %3363 = vmatmul.mubr.bf16.gmra.mrb[60].mxu0 %v1387_v34  ;;  %v1342_v59 = vmax.f32 %v1190_v37, 0.0 }
 0x20b   : > { %v1185_v28 = vadd.f32 %v3923_v55, %v1184_v24  ;;  %v1340_v23 = vmax.f32 %v1182_v39, 0.0 }
 0x20c   : > { %v1343_v20 = vmax.f32 %v1193_v44, 0.0 }
 0x20d   : > { %v1341_v51 = vmax.f32 %v1185_v28, 0.0 }
 0x20e   : > { %v1389_v54 = vpack.c.bf16 %v1343_v20, %v1342_v59 }
 0x20f   : > { %v1388_v17 = vpack.c.bf16 %v1341_v51, %v1340_v23  ;;  %v3292_v21 = vpop.f32.mrb[68].mxu1 }
 0x210   : > { %v1206_v41 = vadd.f32 %v3292_v21, %v3923_v55  ;;  %v1197_v42 = vpop.f32.mrb[69].mxu1 }
 0x211   : > { %v1198_v43 = vadd.f32 %v3923_v55, %v1197_v42  ;;  %v3293_v45 = vpop.f32.mrb[70].mxu1  ;;  %3366 = vmatprep.mubr.bf16.mxu0 %v1388_v17 }
 0x212   : > { %v1209_v46 = vadd.f32 %v3293_v45, %v3923_v55  ;;  %v1200_v47 = vpop.f32.mrb[71].mxu1  ;;  %3367 = vmatmul.mubr.bf16.gmra.mrb[64].mxu0 %v1389_v54  ;;  %v1346_v49 = vmax.f32 %v1206_v41, 0.0 }
 0x213   : > { %v1201_v48 = vadd.f32 %v3923_v55, %v1200_v47  ;;  %v1344_v52 = vmax.f32 %v1198_v43, 0.0 }
 0x214   : > { %v1347_v50 = vmax.f32 %v1209_v46, 0.0 }
 0x215   : > { %v1345_v53 = vmax.f32 %v1201_v48, 0.0 }
 0x216   : > { %v1391_v56 = vpack.c.bf16 %v1347_v50, %v1346_v49 }
 0x217   : > { %v1390_v57 = vpack.c.bf16 %v1345_v53, %v1344_v52  ;;  %v3296_v58 = vpop.f32.mrb[72].mxu1 }
 0x218   : > { %v1222_v60 = vadd.f32 %v3296_v58, %v3923_v55  ;;  %v1213_v61 = vpop.f32.mrb[73].mxu1 }
 0x219   : > { %v1214_v62 = vadd.f32 %v3923_v55, %v1213_v61  ;;  %v3297_v63 = vpop.f32.mrb[74].mxu1  ;;  %3370 = vmatprep.mubr.bf16.mxu0 %v1390_v57 }
 0x21a   : > { %v1225_v0 = vadd.f32 %v3297_v63, %v3923_v55  ;;  %v1216_v1 = vpop.f32.mrb[75].mxu1  ;;  %3371 = vmatmul.mubr.bf16.gmra.mrb[68].mxu0 %v1391_v56  ;;  %v1350_v3 = vmax.f32 %v1222_v60, 0.0 }
 0x21b   : > { %v1217_v2 = vadd.f32 %v3923_v55, %v1216_v1  ;;  %v1348_v5 = vmax.f32 %v1214_v62, 0.0 }
 0x21c   : > { %v1351_v4 = vmax.f32 %v1225_v0, 0.0 }
 0x21d   : > { %v1349_v6 = vmax.f32 %v1217_v2, 0.0 }
 0x21e   : > { %v1393_v7 = vpack.c.bf16 %v1351_v4, %v1350_v3 }
 0x21f   : > { %v1392_v8 = vpack.c.bf16 %v1349_v6, %v1348_v5  ;;  %v3300_v9 = vpop.f32.mrb[76].mxu1 }
 0x220   : > { %v1238_v10 = vadd.f32 %v3300_v9, %v3923_v55  ;;  %v1229_v11 = vpop.f32.mrb[77].mxu1 }
 0x221   : > { %v1230_v12 = vadd.f32 %v3923_v55, %v1229_v11  ;;  %v3301_v13 = vpop.f32.mrb[78].mxu1  ;;  %3374 = vmatprep.mubr.bf16.mxu0 %v1392_v8 }
 0x222   : > { %v1241_v14 = vadd.f32 %v3301_v13, %v3923_v55  ;;  %v1232_v15 = vpop.f32.mrb[79].mxu1  ;;  %3375 = vmatmul.mubr.bf16.gmra.mrb[72].mxu0 %v1393_v7  ;;  %v1354_v18 = vmax.f32 %v1238_v10, 0.0 }
 0x223   : > { %v1233_v16 = vadd.f32 %v3923_v55, %v1232_v15  ;;  %v1352_v22 = vmax.f32 %v1230_v12, 0.0 }
 0x224   : > { %v1355_v19 = vmax.f32 %v1241_v14, 0.0 }
 0x225   : > { %v1353_v25 = vmax.f32 %v1233_v16, 0.0  ;;  %v3634_v16 = vld [vmem:[%s4313_s2 + $0xc0] sm:$0xff]  }
 0x226   : > { %v1395_v26 = vpack.c.bf16 %v1355_v19, %v1354_v18  ;;  %3478 = vmatprep.subr.bf16.mxu0 %v3634_v16  ;;  %v3635_v18 = vld [vmem:[%s4313_s2 + $0xc8] sm:$0xff]  }
 0x227   : > { %v1394_v27 = vpack.c.bf16 %v1353_v25, %v1352_v22  ;;  %v3304_v29 = vpop.f32.mrb[80].mxu1  ;;  %3479 = vmatpush3.bf16.msra.mxu0 %v3634_v16 }
 0x228   : > { %v1254_v30 = vadd.f32 %v3304_v29, %v3923_v55  ;;  %v1245_v31 = vpop.f32.mrb[81].mxu1  ;;  %3480 = vmatprep.subr.bf16.mxu0 %v3635_v18 }
 0x229   : > { %v1246_v32 = vadd.f32 %v3923_v55, %v1245_v31  ;;  %v3305_v33 = vpop.f32.mrb[82].mxu1  ;;  %3378 = vmatprep.mubr.bf16.mxu0 %v1394_v27  ;;  %v3636_v31 = vld [vmem:[%s4313_s2 + $0xd0] sm:$0xff]  }
 0x22a   : > { %v1257_v34 = vadd.f32 %v3305_v33, %v3923_v55  ;;  %v1248_v35 = vpop.f32.mrb[83].mxu1  ;;  %3379 = vmatmul.mubr.bf16.gmra.mrb[76].mxu0 %v1395_v26  ;;  %v1358_v37 = vmax.f32 %v1254_v30, 0.0 }
 0x22b   : > { %v1249_v36 = vadd.f32 %v3923_v55, %v1248_v35  ;;  %v1356_v39 = vmax.f32 %v1246_v32, 0.0  ;;  %3481 = vmatpush3.bf16.msra.mxu0 %v3635_v18  ;;  %v3637_v32 = vld [vmem:[%s4313_s2 + $0xd8] sm:$0xff]  }
 0x22c   : > { %v1359_v38 = vmax.f32 %v1257_v34, 0.0  ;;  %3482 = vmatprep.subr.bf16.mxu0 %v3636_v31 }
 0x22d   : > { %v1357_v40 = vmax.f32 %v1249_v36, 0.0 }
 0x22e   : > { %v1397_v44 = vpack.c.bf16 %v1359_v38, %v1358_v37 }
 0x22f   : > { %v1396_v24 = vpack.c.bf16 %v1357_v40, %v1356_v39  ;;  %v3308_v28 = vpop.f32.mrb[84].mxu1  ;;  %3483 = vmatpush3.bf16.msra.mxu0 %v3636_v31  ;;  %v3638_v39 = vld [vmem:[%s4313_s2 + $0xe0] sm:$0xff]  }
 0x230   : > { %v1270_v59 = vadd.f32 %v3308_v28, %v3923_v55  ;;  %v1261_v20 = vpop.f32.mrb[85].mxu1  ;;  %3484 = vmatprep.subr.bf16.mxu0 %v3637_v32 }
 0x231   : > { %v1262_v23 = vadd.f32 %v3923_v55, %v1261_v20  ;;  %v3309_v51 = vpop.f32.mrb[86].mxu1  ;;  %3382 = vmatprep.mubr.bf16.mxu0 %v1396_v24 }
 0x232   : > { %v1273_v54 = vadd.f32 %v3309_v51, %v3923_v55  ;;  %v1264_v17 = vpop.f32.mrb[87].mxu1  ;;  %3383 = vmatmul.mubr.bf16.gmra.mrb[80].mxu0 %v1397_v44  ;;  %v1362_v41 = vmax.f32 %v1270_v59, 0.0 }
 0x233   : > { %v1265_v21 = vadd.f32 %v3923_v55, %v1264_v17  ;;  %v1360_v43 = vmax.f32 %v1262_v23, 0.0  ;;  %3485 = vmatpush3.bf16.msra.mxu0 %v3637_v32 }
 0x234   : > { %v1363_v42 = vmax.f32 %v1273_v54, 0.0  ;;  %3486 = vmatprep.subr.bf16.mxu0 %v3638_v39  ;;  %v3639_v54 = vld [vmem:[%s4313_s2 + $0xe8] sm:$0xff]  }
 0x235   : > { %v1361_v45 = vmax.f32 %v1265_v21, 0.0 }
 0x236   : > { %v1399_v46 = vpack.c.bf16 %v1363_v42, %v1362_v41 }
 0x237   : > { %v1398_v47 = vpack.c.bf16 %v1361_v45, %v1360_v43  ;;  %v3312_v48 = vpop.f32.mrb[88].mxu1  ;;  %3487 = vmatpush3.bf16.msra.mxu0 %v3638_v39 }
 0x238   : > { %v1286_v49 = vadd.f32 %v3312_v48, %v3923_v55  ;;  %v1277_v50 = vpop.f32.mrb[89].mxu1  ;;  %3488 = vmatprep.subr.bf16.mxu0 %v3639_v54 }
 0x239   : > { %v1278_v52 = vadd.f32 %v3923_v55, %v1277_v50  ;;  %v3313_v53 = vpop.f32.mrb[90].mxu1  ;;  %3386 = vmatprep.mubr.bf16.mxu0 %v1398_v47 }
 0x23a   : > { %v1289_v56 = vadd.f32 %v3313_v53, %v3923_v55  ;;  %v1280_v57 = vpop.f32.mrb[91].mxu1  ;;  %3387 = vmatmul.mubr.bf16.gmra.mrb[84].mxu0 %v1399_v46  ;;  %v1366_v60 = vmax.f32 %v1286_v49, 0.0  ;;  %v3640_v46 = vld [vmem:[%s4313_s2 + $0xf0] sm:$0xff]  }
 0x23b   : > { %v1281_v58 = vadd.f32 %v3923_v55, %v1280_v57  ;;  %v1364_v62 = vmax.f32 %v1278_v52, 0.0  ;;  %3489 = vmatpush3.bf16.msra.mxu0 %v3639_v54 }
 0x23c   : > { %v1367_v61 = vmax.f32 %v1289_v56, 0.0  ;;  %3490 = vmatprep.subr.bf16.mxu0 %v3640_v46 }
 0x23d   : > { %v1365_v63 = vmax.f32 %v1281_v58, 0.0  ;;  %v3641_v58 = vld [vmem:[%s4313_s2 + $0xf8] sm:$0xff]  }
 0x23e   : > { %v1401_v0 = vpack.c.bf16 %v1367_v61, %v1366_v60 }
 0x23f   : > { %v1400_v1 = vpack.c.bf16 %v1365_v63, %v1364_v62  ;;  %v3316_v2 = vpop.f32.mrb[92].mxu1  ;;  %3491 = vmatpush3.bf16.msra.mxu0 %v3640_v46 }
 0x240   : > { %v1302_v3 = vadd.f32 %v3316_v2, %v3923_v55  ;;  %v1293_v4 = vpop.f32.mrb[93].mxu1  ;;  %3492 = vmatprep.subr.bf16.mxu0 %v3641_v58 }
 0x241   : > { %v1294_v5 = vadd.f32 %v3923_v55, %v1293_v4  ;;  %v3317_v6 = vpop.f32.mrb[94].mxu1  ;;  %3390 = vmatprep.mubr.bf16.mxu0 %v1400_v1 }
 0x242   : > { %v1305_v7 = vadd.f32 %v3317_v6, %v3923_v55  ;;  %v1296_v8 = vpop.f32.mrb[95].mxu1  ;;  %3391 = vmatmul.mubr.bf16.gmra.mrb[88].mxu0 %v1401_v0  ;;  %v1370_v10 = vmax.f32 %v1302_v3, 0.0 }
 0x243   : > { %v1297_v9 = vadd.f32 %v3923_v55, %v1296_v8  ;;  %v1368_v12 = vmax.f32 %v1294_v5, 0.0  ;;  %v4016_v55 = vld [vmem:[%s4314_s3 + $0x2] ss:$0 sm:$0xff]  ;;  %3493 = vmatpush3.bf16.msra.mxu0 %v3641_v58 }
 0x244   : > { %v1371_v11 = vmax.f32 %v1305_v7, 0.0 }
 0x245   : > { %v1369_v13 = vmax.f32 %v1297_v9, 0.0 }
 0x246   : > { %v1403_v14 = vpack.c.bf16 %v1371_v11, %v1370_v10 }
 0x247   : > { %v1402_v15 = vpack.c.bf16 %v1369_v13, %v1368_v12 }
 0x249   : > { %3394 = vmatprep.mubr.bf16.mxu0 %v1402_v15 }
 0x24a   : > { %3395 = vmatmul.mubr.bf16.gmra.mrb[92].mxu0 %v1403_v14 }
 0x2a5   : > { %v3336_v19 = vpop.f32.mrb[32].mxu0 }
 0x2a6   : > { %v1520_v22 = vadd.f32 %v3336_v19, %v4016_v55  ;;  %v1511_v25 = vpop.f32.mrb[33].mxu0 }
 0x2a7   : > { %v1512_v26 = vadd.f32 %v4016_v55, %v1511_v25  ;;  %v3337_v27 = vpop.f32.mrb[34].mxu0 }
 0x2a8   : > { %v1523_v29 = vadd.f32 %v3337_v27, %v4016_v55  ;;  %v1514_v30 = vpop.f32.mrb[35].mxu0  ;;  %v1768_v34 = vmax.f32 %v1520_v22, 0.0 }
 0x2a9   : > { %v1515_v33 = vadd.f32 %v4016_v55, %v1514_v30  ;;  %v1766_v36 = vmax.f32 %v1512_v26, 0.0 }
 0x2aa   : > { %v1769_v35 = vmax.f32 %v1523_v29, 0.0 }
 0x2ab   : > { %v1767_v37 = vmax.f32 %v1515_v33, 0.0 }
 0x2ac   : > { %v1831_v38 = vpack.c.bf16 %v1769_v35, %v1768_v34 }
 0x2ad   : > { %v1830_v40 = vpack.c.bf16 %v1767_v37, %v1766_v36  ;;  %v3340_v44 = vpop.f32.mrb[36].mxu0 }
 0x2ae   : > { %v1536_v24 = vadd.f32 %v3340_v44, %v4016_v55  ;;  %v1527_v28 = vpop.f32.mrb[37].mxu0 }
 0x2af   : > { %v1528_v59 = vadd.f32 %v4016_v55, %v1527_v28  ;;  %v3341_v20 = vpop.f32.mrb[38].mxu0  ;;  %3414 = vmatprep.mubr.bf16.mxu1 %v1830_v40 }
 0x2b0   : > { %v1539_v23 = vadd.f32 %v3341_v20, %v4016_v55  ;;  %v1530_v51 = vpop.f32.mrb[39].mxu0  ;;  %3415 = vmatmul.mubr.bf16.vlgmr.msra.gmra.mrb[96].mxu1 %v1831_v38  ;;  %v1772_v21 = vmax.f32 %v1536_v24, 0.0 }
 0x2b1   : > { %v1531_v17 = vadd.f32 %v4016_v55, %v1530_v51  ;;  %v1770_v42 = vmax.f32 %v1528_v59, 0.0 }
 0x2b2   : > { %v1773_v41 = vmax.f32 %v1539_v23, 0.0 }
 0x2b3   : > { %v1771_v43 = vmax.f32 %v1531_v17, 0.0 }
 0x2b4   : > { %v1833_v45 = vpack.c.bf16 %v1773_v41, %v1772_v21 }
 0x2b5   : > { %v1832_v47 = vpack.c.bf16 %v1771_v43, %v1770_v42  ;;  %v3344_v48 = vpop.f32.mrb[40].mxu0 }
 0x2b6   : > { %v1552_v49 = vadd.f32 %v3344_v48, %v4016_v55  ;;  %v1543_v50 = vpop.f32.mrb[41].mxu0 }
 0x2b7   : > { %v1544_v52 = vadd.f32 %v4016_v55, %v1543_v50  ;;  %v3345_v53 = vpop.f32.mrb[42].mxu0  ;;  %3418 = vmatprep.mubr.bf16.mxu1 %v1832_v47 }
 0x2b8   : > { %v1555_v56 = vadd.f32 %v3345_v53, %v4016_v55  ;;  %v1546_v57 = vpop.f32.mrb[43].mxu0  ;;  %3419 = vmatmul.mubr.bf16.gmra.mrb[100].mxu1 %v1833_v45  ;;  %v1776_v61 = vmax.f32 %v1552_v49, 0.0 }
 0x2b9   : > { %v1547_v60 = vadd.f32 %v4016_v55, %v1546_v57  ;;  %v1774_v63 = vmax.f32 %v1544_v52, 0.0 }
 0x2ba   : > { %v1777_v62 = vmax.f32 %v1555_v56, 0.0 }
 0x2bb   : > { %v1775_v0 = vmax.f32 %v1547_v60, 0.0 }
 0x2bc   : > { %v1835_v1 = vpack.c.bf16 %v1777_v62, %v1776_v61 }
 0x2bd   : > { %v1834_v2 = vpack.c.bf16 %v1775_v0, %v1774_v63  ;;  %v3348_v3 = vpop.f32.mrb[44].mxu0 }
 0x2be   : > { %v1568_v4 = vadd.f32 %v3348_v3, %v4016_v55  ;;  %v1559_v5 = vpop.f32.mrb[45].mxu0 }
 0x2bf   : > { %v1560_v6 = vadd.f32 %v4016_v55, %v1559_v5  ;;  %v3349_v7 = vpop.f32.mrb[46].mxu0  ;;  %3422 = vmatprep.mubr.bf16.mxu1 %v1834_v2 }
 0x2c0   : > { %v1571_v8 = vadd.f32 %v3349_v7, %v4016_v55  ;;  %v1562_v9 = vpop.f32.mrb[47].mxu0  ;;  %3423 = vmatmul.mubr.bf16.gmra.mrb[104].mxu1 %v1835_v1  ;;  %v1780_v11 = vmax.f32 %v1568_v4, 0.0 }
 0x2c1   : > { %v1563_v10 = vadd.f32 %v4016_v55, %v1562_v9  ;;  %v1778_v13 = vmax.f32 %v1560_v6, 0.0 }
 0x2c2   : > { %v1781_v12 = vmax.f32 %v1571_v8, 0.0 }
 0x2c3   : > { %v1779_v14 = vmax.f32 %v1563_v10, 0.0 }
 0x2c4   : > { %v1837_v15 = vpack.c.bf16 %v1781_v12, %v1780_v11 }
 0x2c5   : > { %v1836_v16 = vpack.c.bf16 %v1779_v14, %v1778_v13  ;;  %v3352_v18 = vpop.f32.mrb[48].mxu0 }
 0x2c6   : > { %v1584_v19 = vadd.f32 %v3352_v18, %v4016_v55  ;;  %v1575_v22 = vpop.f32.mrb[49].mxu0 }
 0x2c7   : > { %v1576_v25 = vadd.f32 %v4016_v55, %v1575_v22  ;;  %v3353_v26 = vpop.f32.mrb[50].mxu0  ;;  %3426 = vmatprep.mubr.bf16.mxu1 %v1836_v16 }
 0x2c8   : > { %v1587_v27 = vadd.f32 %v3353_v26, %v4016_v55  ;;  %v1578_v29 = vpop.f32.mrb[51].mxu0  ;;  %3427 = vmatmul.mubr.bf16.gmra.mrb[108].mxu1 %v1837_v15  ;;  %v1784_v31 = vmax.f32 %v1584_v19, 0.0 }
 0x2c9   : > { %v1579_v30 = vadd.f32 %v4016_v55, %v1578_v29  ;;  %v1782_v33 = vmax.f32 %v1576_v25, 0.0 }
 0x2ca   : > { %v1785_v32 = vmax.f32 %v1587_v27, 0.0 }
 0x2cb   : > { %v1783_v34 = vmax.f32 %v1579_v30, 0.0 }
 0x2cc   : > { %v1839_v35 = vpack.c.bf16 %v1785_v32, %v1784_v31 }
 0x2cd   : > { %v1838_v36 = vpack.c.bf16 %v1783_v34, %v1782_v33  ;;  %v3356_v37 = vpop.f32.mrb[52].mxu0 }
 0x2ce   : > { %v1600_v38 = vadd.f32 %v3356_v37, %v4016_v55  ;;  %v1591_v39 = vpop.f32.mrb[53].mxu0 }
 0x2cf   : > { %v1592_v40 = vadd.f32 %v4016_v55, %v1591_v39  ;;  %v3357_v44 = vpop.f32.mrb[54].mxu0  ;;  %3430 = vmatprep.mubr.bf16.mxu1 %v1838_v36 }
 0x2d0   : > { %v1603_v24 = vadd.f32 %v3357_v44, %v4016_v55  ;;  %v1594_v28 = vpop.f32.mrb[55].mxu0  ;;  %3431 = vmatmul.mubr.bf16.gmra.mrb[112].mxu1 %v1839_v35  ;;  %v1788_v20 = vmax.f32 %v1600_v38, 0.0 }
 0x2d1   : > { %v1595_v59 = vadd.f32 %v4016_v55, %v1594_v28  ;;  %v1786_v51 = vmax.f32 %v1592_v40, 0.0 }
 0x2d2   : > { %v1789_v23 = vmax.f32 %v1603_v24, 0.0 }
 0x2d3   : > { %v1787_v54 = vmax.f32 %v1595_v59, 0.0 }
 0x2d4   : > { %v1841_v17 = vpack.c.bf16 %v1789_v23, %v1788_v20 }
 0x2d5   : > { %v1840_v21 = vpack.c.bf16 %v1787_v54, %v1786_v51  ;;  %v3360_v41 = vpop.f32.mrb[56].mxu0 }
 0x2d6   : > { %v1616_v42 = vadd.f32 %v3360_v41, %v4016_v55  ;;  %v1607_v43 = vpop.f32.mrb[57].mxu0 }
 0x2d7   : > { %v1608_v45 = vadd.f32 %v4016_v55, %v1607_v43  ;;  %v3361_v46 = vpop.f32.mrb[58].mxu0  ;;  %3434 = vmatprep.mubr.bf16.mxu1 %v1840_v21 }
 0x2d8   : > { %v1619_v47 = vadd.f32 %v3361_v46, %v4016_v55  ;;  %v1610_v48 = vpop.f32.mrb[59].mxu0  ;;  %3435 = vmatmul.mubr.bf16.gmra.mrb[116].mxu1 %v1841_v17  ;;  %v1792_v50 = vmax.f32 %v1616_v42, 0.0 }
 0x2d9   : > { %v1611_v49 = vadd.f32 %v4016_v55, %v1610_v48  ;;  %v1790_v53 = vmax.f32 %v1608_v45, 0.0 }
 0x2da   : > { %v1793_v52 = vmax.f32 %v1619_v47, 0.0 }
 0x2db   : > { %v1791_v56 = vmax.f32 %v1611_v49, 0.0 }
 0x2dc   : > { %v1843_v57 = vpack.c.bf16 %v1793_v52, %v1792_v50 }
 0x2dd   : > { %v1842_v58 = vpack.c.bf16 %v1791_v56, %v1790_v53  ;;  %v3364_v60 = vpop.f32.mrb[60].mxu0 }
 0x2de   : > { %v1632_v61 = vadd.f32 %v3364_v60, %v4016_v55  ;;  %v1623_v62 = vpop.f32.mrb[61].mxu0 }
 0x2df   : > { %v1624_v63 = vadd.f32 %v4016_v55, %v1623_v62  ;;  %v3365_v0 = vpop.f32.mrb[62].mxu0  ;;  %3438 = vmatprep.mubr.bf16.mxu1 %v1842_v58 }
 0x2e0   : > { %v1635_v1 = vadd.f32 %v3365_v0, %v4016_v55  ;;  %v1626_v2 = vpop.f32.mrb[63].mxu0  ;;  %3439 = vmatmul.mubr.bf16.gmra.mrb[120].mxu1 %v1843_v57  ;;  %v1796_v4 = vmax.f32 %v1632_v61, 0.0 }
 0x2e1   : > { %v1627_v3 = vadd.f32 %v4016_v55, %v1626_v2  ;;  %v1794_v6 = vmax.f32 %v1624_v63, 0.0 }
 0x2e2   : > { %v1797_v5 = vmax.f32 %v1635_v1, 0.0 }
 0x2e3   : > { %v1795_v7 = vmax.f32 %v1627_v3, 0.0 }
 0x2e4   : > { %v1845_v8 = vpack.c.bf16 %v1797_v5, %v1796_v4 }
 0x2e5   : > { %v1844_v9 = vpack.c.bf16 %v1795_v7, %v1794_v6  ;;  %v3368_v10 = vpop.f32.mrb[64].mxu0 }
 0x2e6   : > { %v1648_v11 = vadd.f32 %v3368_v10, %v4016_v55  ;;  %v1639_v12 = vpop.f32.mrb[65].mxu0 }
 0x2e7   : > { %v1640_v13 = vadd.f32 %v4016_v55, %v1639_v12  ;;  %v3369_v14 = vpop.f32.mrb[66].mxu0  ;;  %3442 = vmatprep.mubr.bf16.mxu1 %v1844_v9 }
 0x2e8   : > { %v1651_v15 = vadd.f32 %v3369_v14, %v4016_v55  ;;  %v1642_v16 = vpop.f32.mrb[67].mxu0  ;;  %3443 = vmatmul.mubr.bf16.gmra.mrb[124].mxu1 %v1845_v8  ;;  %v1800_v19 = vmax.f32 %v1648_v11, 0.0 }
 0x2e9   : > { %v1643_v18 = vadd.f32 %v4016_v55, %v1642_v16  ;;  %v1798_v25 = vmax.f32 %v1640_v13, 0.0 }
 0x2ea   : > { %v1801_v22 = vmax.f32 %v1651_v15, 0.0 }
 0x2eb   : > { %v1799_v26 = vmax.f32 %v1643_v18, 0.0 }
 0x2ec   : > { %v1847_v27 = vpack.c.bf16 %v1801_v22, %v1800_v19 }
 0x2ed   : > { %v1846_v29 = vpack.c.bf16 %v1799_v26, %v1798_v25  ;;  %v3372_v30 = vpop.f32.mrb[68].mxu0 }
 0x2ee   : > { %v1664_v31 = vadd.f32 %v3372_v30, %v4016_v55  ;;  %v1655_v32 = vpop.f32.mrb[69].mxu0 }
 0x2ef   : > { %v1656_v33 = vadd.f32 %v4016_v55, %v1655_v32  ;;  %v3373_v34 = vpop.f32.mrb[70].mxu0  ;;  %3446 = vmatprep.mubr.bf16.mxu1 %v1846_v29 }
 0x2f0   : > { %v1667_v35 = vadd.f32 %v3373_v34, %v4016_v55  ;;  %v1658_v36 = vpop.f32.mrb[71].mxu0  ;;  %3447 = vmatmul.mubr.bf16.gmra.mrb[128].mxu1 %v1847_v27  ;;  %v1804_v38 = vmax.f32 %v1664_v31, 0.0 }
 0x2f1   : > { %v1659_v37 = vadd.f32 %v4016_v55, %v1658_v36  ;;  %v1802_v40 = vmax.f32 %v1656_v33, 0.0 }
 0x2f2   : > { %v1805_v39 = vmax.f32 %v1667_v35, 0.0 }
 0x2f3   : > { %v1803_v44 = vmax.f32 %v1659_v37, 0.0 }
 0x2f4   : > { %v1849_v24 = vpack.c.bf16 %v1805_v39, %v1804_v38 }
 0x2f5   : > { %v1848_v28 = vpack.c.bf16 %v1803_v44, %v1802_v40  ;;  %v3376_v59 = vpop.f32.mrb[72].mxu0 }
 0x2f6   : > { %v1680_v20 = vadd.f32 %v3376_v59, %v4016_v55  ;;  %v1671_v23 = vpop.f32.mrb[73].mxu0 }
 0x2f7   : > { %v1672_v51 = vadd.f32 %v4016_v55, %v1671_v23  ;;  %v3377_v54 = vpop.f32.mrb[74].mxu0  ;;  %3450 = vmatprep.mubr.bf16.mxu1 %v1848_v28 }
 0x2f8   : > { %v1683_v17 = vadd.f32 %v3377_v54, %v4016_v55  ;;  %v1674_v21 = vpop.f32.mrb[75].mxu0  ;;  %3451 = vmatmul.mubr.bf16.gmra.mrb[132].mxu1 %v1849_v24  ;;  %v1808_v42 = vmax.f32 %v1680_v20, 0.0 }
 0x2f9   : > { %v1675_v41 = vadd.f32 %v4016_v55, %v1674_v21  ;;  %v1806_v45 = vmax.f32 %v1672_v51, 0.0 }
 0x2fa   : > { %v1809_v43 = vmax.f32 %v1683_v17, 0.0 }
 0x2fb   : > { %v1807_v46 = vmax.f32 %v1675_v41, 0.0 }
 0x2fc   : > { %v1851_v47 = vpack.c.bf16 %v1809_v43, %v1808_v42 }
 0x2fd   : > { %v1850_v48 = vpack.c.bf16 %v1807_v46, %v1806_v45  ;;  %v3380_v49 = vpop.f32.mrb[76].mxu0 }
 0x2fe   : > { %v1696_v50 = vadd.f32 %v3380_v49, %v4016_v55  ;;  %v1687_v52 = vpop.f32.mrb[77].mxu0 }
 0x2ff   : > { %v1688_v53 = vadd.f32 %v4016_v55, %v1687_v52  ;;  %v3381_v56 = vpop.f32.mrb[78].mxu0  ;;  %3454 = vmatprep.mubr.bf16.mxu1 %v1850_v48 }
 0x300   : > { %v1699_v57 = vadd.f32 %v3381_v56, %v4016_v55  ;;  %v1690_v58 = vpop.f32.mrb[79].mxu0  ;;  %3455 = vmatmul.mubr.bf16.gmra.mrb[136].mxu1 %v1851_v47  ;;  %v1812_v61 = vmax.f32 %v1696_v50, 0.0 }
 0x301   : > { %v1691_v60 = vadd.f32 %v4016_v55, %v1690_v58  ;;  %v1810_v63 = vmax.f32 %v1688_v53, 0.0 }
 0x302   : > { %v1813_v62 = vmax.f32 %v1699_v57, 0.0 }
 0x303   : > { %v1811_v0 = vmax.f32 %v1691_v60, 0.0  ;;  %v4103_v60 = vld [vmem:[%s4314_s3 + $0x3] ss:$0 sm:$0xff] }
 0x304   : > { %v1853_v1 = vpack.c.bf16 %v1813_v62, %v1812_v61 }
 0x305   : > { %v1852_v2 = vpack.c.bf16 %v1811_v0, %v1810_v63  ;;  %v3384_v3 = vpop.f32.mrb[80].mxu0 }
 0x306   : > { %v1712_v4 = vadd.f32 %v3384_v3, %v4016_v55  ;;  %v1703_v5 = vpop.f32.mrb[81].mxu0 }
 0x307   : > { %v1704_v6 = vadd.f32 %v4016_v55, %v1703_v5  ;;  %v3385_v7 = vpop.f32.mrb[82].mxu0  ;;  %3458 = vmatprep.mubr.bf16.mxu1 %v1852_v2 }
 0x308   : > { %v1715_v8 = vadd.f32 %v3385_v7, %v4016_v55  ;;  %v1706_v9 = vpop.f32.mrb[83].mxu0  ;;  %3459 = vmatmul.mubr.bf16.gmra.mrb[140].mxu1 %v1853_v1  ;;  %v1816_v11 = vmax.f32 %v1712_v4, 0.0 }
 0x309   : > { %v1707_v10 = vadd.f32 %v4016_v55, %v1706_v9  ;;  %v1814_v13 = vmax.f32 %v1704_v6, 0.0 }
 0x30a   : > { %v1817_v12 = vmax.f32 %v1715_v8, 0.0 }
 0x30b   : > { %v1815_v14 = vmax.f32 %v1707_v10, 0.0 }
 0x30c   : > { %v1855_v15 = vpack.c.bf16 %v1817_v12, %v1816_v11 }
 0x30d   : > { %v1854_v16 = vpack.c.bf16 %v1815_v14, %v1814_v13  ;;  %v3388_v18 = vpop.f32.mrb[84].mxu0 }
 0x30e   : > { %v1728_v19 = vadd.f32 %v3388_v18, %v4016_v55  ;;  %v1719_v22 = vpop.f32.mrb[85].mxu0 }
 0x30f   : > { %v1720_v25 = vadd.f32 %v4016_v55, %v1719_v22  ;;  %v3389_v26 = vpop.f32.mrb[86].mxu0  ;;  %3462 = vmatprep.mubr.bf16.mxu1 %v1854_v16 }
 0x310   : > { %v1731_v27 = vadd.f32 %v3389_v26, %v4016_v55  ;;  %v1722_v29 = vpop.f32.mrb[87].mxu0  ;;  %3463 = vmatmul.mubr.bf16.gmra.mrb[144].mxu1 %v1855_v15  ;;  %v1820_v31 = vmax.f32 %v1728_v19, 0.0 }
 0x311   : > { %v1723_v30 = vadd.f32 %v4016_v55, %v1722_v29  ;;  %v1818_v33 = vmax.f32 %v1720_v25, 0.0 }
 0x312   : > { %v1821_v32 = vmax.f32 %v1731_v27, 0.0 }
 0x313   : > { %v1819_v34 = vmax.f32 %v1723_v30, 0.0 }
 0x314   : > { %v1857_v35 = vpack.c.bf16 %v1821_v32, %v1820_v31 }
 0x315   : > { %v1856_v36 = vpack.c.bf16 %v1819_v34, %v1818_v33  ;;  %v3392_v37 = vpop.f32.mrb[88].mxu0 }
 0x316   : > { %v1744_v38 = vadd.f32 %v3392_v37, %v4016_v55  ;;  %v1735_v39 = vpop.f32.mrb[89].mxu0 }
 0x317   : > { %v1736_v40 = vadd.f32 %v4016_v55, %v1735_v39  ;;  %v3393_v44 = vpop.f32.mrb[90].mxu0  ;;  %3466 = vmatprep.mubr.bf16.mxu1 %v1856_v36 }
 0x318   : > { %v1747_v24 = vadd.f32 %v3393_v44, %v4016_v55  ;;  %v1738_v28 = vpop.f32.mrb[91].mxu0  ;;  %3467 = vmatmul.mubr.bf16.gmra.mrb[148].mxu1 %v1857_v35  ;;  %v1824_v20 = vmax.f32 %v1744_v38, 0.0 }
 0x319   : > { %v1739_v59 = vadd.f32 %v4016_v55, %v1738_v28  ;;  %v1822_v51 = vmax.f32 %v1736_v40, 0.0 }
 0x31a   : > { %v1825_v23 = vmax.f32 %v1747_v24, 0.0 }
 0x31b   : > { %v1823_v54 = vmax.f32 %v1739_v59, 0.0 }
 0x31c   : > { %v1859_v17 = vpack.c.bf16 %v1825_v23, %v1824_v20 }
 0x31d   : > { %v1858_v21 = vpack.c.bf16 %v1823_v54, %v1822_v51  ;;  %v3396_v41 = vpop.f32.mrb[92].mxu0 }
 0x31e   : > { %v1760_v42 = vadd.f32 %v3396_v41, %v4016_v55  ;;  %v1751_v43 = vpop.f32.mrb[93].mxu0 }
 0x31f   : > { %v1752_v45 = vadd.f32 %v4016_v55, %v1751_v43  ;;  %v3397_v46 = vpop.f32.mrb[94].mxu0  ;;  %3470 = vmatprep.mubr.bf16.mxu1 %v1858_v21 }
 0x320   : > { %v1763_v47 = vadd.f32 %v3397_v46, %v4016_v55  ;;  %v1754_v48 = vpop.f32.mrb[95].mxu0  ;;  %3471 = vmatmul.mubr.bf16.gmra.mrb[152].mxu1 %v1859_v17  ;;  %v1828_v50 = vmax.f32 %v1760_v42, 0.0 }
 0x321   : > { %v1755_v49 = vadd.f32 %v4016_v55, %v1754_v48  ;;  %v1826_v53 = vmax.f32 %v1752_v45, 0.0 }
 0x322   : > { %v1829_v52 = vmax.f32 %v1763_v47, 0.0 }
 0x323   : > { %v1827_v56 = vmax.f32 %v1755_v49, 0.0 }
 0x324   : > { %v1861_v57 = vpack.c.bf16 %v1829_v52, %v1828_v50 }
 0x325   : > { %v1860_v58 = vpack.c.bf16 %v1827_v56, %v1826_v53 }
 0x327   : > { %3474 = vmatprep.mubr.bf16.mxu1 %v1860_v58 }
 0x328   : > { %3475 = vmatmul.mubr.bf16.gmra.mrb[156].mxu1 %v1861_v57 }
 0x383   : > { %v3416_v61 = vpop.f32.mrb[96].mxu1 }
 0x384   : > { %v1978_v62 = vadd.f32 %v3416_v61, %v4103_v60  ;;  %v1969_v63 = vpop.f32.mrb[97].mxu1 }
 0x385   : > { %v1970_v0 = vadd.f32 %v4103_v60, %v1969_v63  ;;  %v3417_v55 = vpop.f32.mrb[98].mxu1 }
 0x386   : > { %v1981_v1 = vadd.f32 %v3417_v55, %v4103_v60  ;;  %v1972_v2 = vpop.f32.mrb[99].mxu1  ;;  %v2226_v4 = vmax.f32 %v1978_v62, 0.0 }
 0x387   : > { %v1973_v3 = vadd.f32 %v4103_v60, %v1972_v2  ;;  %v2224_v6 = vmax.f32 %v1970_v0, 0.0 }
 0x388   : > { %v2227_v5 = vmax.f32 %v1981_v1, 0.0 }
 0x389   : > { %v2225_v7 = vmax.f32 %v1973_v3, 0.0 }
 0x38a   : > { %v2289_v8 = vpack.c.bf16 %v2227_v5, %v2226_v4 }
 0x38b   : > { %v2288_v9 = vpack.c.bf16 %v2225_v7, %v2224_v6  ;;  %v3420_v10 = vpop.f32.mrb[100].mxu1 }
 0x38c   : > { %v1994_v11 = vadd.f32 %v3420_v10, %v4103_v60  ;;  %v1985_v12 = vpop.f32.mrb[101].mxu1 }
 0x38d   : > { %v1986_v13 = vadd.f32 %v4103_v60, %v1985_v12  ;;  %v3421_v14 = vpop.f32.mrb[102].mxu1  ;;  %3494 = vmatprep.mubr.bf16.mxu0 %v2288_v9 }
 0x38e   : > { %v1997_v15 = vadd.f32 %v3421_v14, %v4103_v60  ;;  %v1988_v16 = vpop.f32.mrb[103].mxu1  ;;  %3495 = vmatmul.mubr.bf16.vlgmr.msra.gmra.mrb[96].mxu0 %v2289_v8  ;;  %v2230_v19 = vmax.f32 %v1994_v11, 0.0 }
 0x38f   : > { %v1989_v18 = vadd.f32 %v4103_v60, %v1988_v16  ;;  %v2228_v25 = vmax.f32 %v1986_v13, 0.0 }
 0x390   : > { %v2231_v22 = vmax.f32 %v1997_v15, 0.0 }
 0x391   : > { %v2229_v26 = vmax.f32 %v1989_v18, 0.0 }
 0x392   : > { %v2291_v27 = vpack.c.bf16 %v2231_v22, %v2230_v19 }
 0x393   : > { %v2290_v29 = vpack.c.bf16 %v2229_v26, %v2228_v25  ;;  %v3424_v30 = vpop.f32.mrb[104].mxu1 }
 0x394   : > { %v2010_v31 = vadd.f32 %v3424_v30, %v4103_v60  ;;  %v2001_v32 = vpop.f32.mrb[105].mxu1 }
 0x395   : > { %v2002_v33 = vadd.f32 %v4103_v60, %v2001_v32  ;;  %v3425_v34 = vpop.f32.mrb[106].mxu1  ;;  %3498 = vmatprep.mubr.bf16.mxu0 %v2290_v29 }
 0x396   : > { %v2013_v35 = vadd.f32 %v3425_v34, %v4103_v60  ;;  %v2004_v36 = vpop.f32.mrb[107].mxu1  ;;  %3499 = vmatmul.mubr.bf16.gmra.mrb[100].mxu0 %v2291_v27  ;;  %v2234_v38 = vmax.f32 %v2010_v31, 0.0 }
 0x397   : > { %v2005_v37 = vadd.f32 %v4103_v60, %v2004_v36  ;;  %v2232_v40 = vmax.f32 %v2002_v33, 0.0 }
 0x398   : > { %v2235_v39 = vmax.f32 %v2013_v35, 0.0 }
 0x399   : > { %v2233_v44 = vmax.f32 %v2005_v37, 0.0 }
 0x39a   : > { %v2293_v24 = vpack.c.bf16 %v2235_v39, %v2234_v38 }
 0x39b   : > { %v2292_v28 = vpack.c.bf16 %v2233_v44, %v2232_v40  ;;  %v3428_v59 = vpop.f32.mrb[108].mxu1 }
 0x39c   : > { %v2026_v20 = vadd.f32 %v3428_v59, %v4103_v60  ;;  %v2017_v23 = vpop.f32.mrb[109].mxu1 }
 0x39d   : > { %v2018_v51 = vadd.f32 %v4103_v60, %v2017_v23  ;;  %v3429_v54 = vpop.f32.mrb[110].mxu1  ;;  %3502 = vmatprep.mubr.bf16.mxu0 %v2292_v28 }
 0x39e   : > { %v2029_v17 = vadd.f32 %v3429_v54, %v4103_v60  ;;  %v2020_v21 = vpop.f32.mrb[111].mxu1  ;;  %3503 = vmatmul.mubr.bf16.gmra.mrb[104].mxu0 %v2293_v24  ;;  %v2238_v42 = vmax.f32 %v2026_v20, 0.0 }
 0x39f   : > { %v2021_v41 = vadd.f32 %v4103_v60, %v2020_v21  ;;  %v2236_v45 = vmax.f32 %v2018_v51, 0.0 }
 0x3a0   : > { %v2239_v43 = vmax.f32 %v2029_v17, 0.0 }
 0x3a1   : > { %v2237_v46 = vmax.f32 %v2021_v41, 0.0 }
 0x3a2   : > { %v2295_v47 = vpack.c.bf16 %v2239_v43, %v2238_v42 }
 0x3a3   : > { %v2294_v48 = vpack.c.bf16 %v2237_v46, %v2236_v45  ;;  %v3432_v49 = vpop.f32.mrb[112].mxu1 }
 0x3a4   : > { %v2042_v50 = vadd.f32 %v3432_v49, %v4103_v60  ;;  %v2033_v52 = vpop.f32.mrb[113].mxu1 }
 0x3a5   : > { %v2034_v53 = vadd.f32 %v4103_v60, %v2033_v52  ;;  %v3433_v56 = vpop.f32.mrb[114].mxu1  ;;  %3506 = vmatprep.mubr.bf16.mxu0 %v2294_v48 }
 0x3a6   : > { %v2045_v57 = vadd.f32 %v3433_v56, %v4103_v60  ;;  %v2036_v58 = vpop.f32.mrb[115].mxu1  ;;  %3507 = vmatmul.mubr.bf16.gmra.mrb[108].mxu0 %v2295_v47  ;;  %v2242_v62 = vmax.f32 %v2042_v50, 0.0 }
 0x3a7   : > { %v2037_v61 = vadd.f32 %v4103_v60, %v2036_v58  ;;  %v2240_v0 = vmax.f32 %v2034_v53, 0.0 }
 0x3a8   : > { %v2243_v63 = vmax.f32 %v2045_v57, 0.0 }
 0x3a9   : > { %v2241_v55 = vmax.f32 %v2037_v61, 0.0 }
 0x3aa   : > { %v2297_v1 = vpack.c.bf16 %v2243_v63, %v2242_v62 }
 0x3ab   : > { %v2296_v2 = vpack.c.bf16 %v2241_v55, %v2240_v0  ;;  %v3436_v3 = vpop.f32.mrb[116].mxu1 }
 0x3ac   : > { %v2058_v4 = vadd.f32 %v3436_v3, %v4103_v60  ;;  %v2049_v5 = vpop.f32.mrb[117].mxu1 }
 0x3ad   : > { %v2050_v6 = vadd.f32 %v4103_v60, %v2049_v5  ;;  %v3437_v7 = vpop.f32.mrb[118].mxu1  ;;  %3510 = vmatprep.mubr.bf16.mxu0 %v2296_v2 }
 0x3ae   : > { %v2061_v8 = vadd.f32 %v3437_v7, %v4103_v60  ;;  %v2052_v9 = vpop.f32.mrb[119].mxu1  ;;  %3511 = vmatmul.mubr.bf16.gmra.mrb[112].mxu0 %v2297_v1  ;;  %v2246_v11 = vmax.f32 %v2058_v4, 0.0 }
 0x3af   : > { %v2053_v10 = vadd.f32 %v4103_v60, %v2052_v9  ;;  %v2244_v13 = vmax.f32 %v2050_v6, 0.0 }
 0x3b0   : > { %v2247_v12 = vmax.f32 %v2061_v8, 0.0 }
 0x3b1   : > { %v2245_v14 = vmax.f32 %v2053_v10, 0.0 }
 0x3b2   : > { %v2299_v15 = vpack.c.bf16 %v2247_v12, %v2246_v11 }
 0x3b3   : > { %v2298_v16 = vpack.c.bf16 %v2245_v14, %v2244_v13  ;;  %v3440_v18 = vpop.f32.mrb[120].mxu1 }
 0x3b4   : > { %v2074_v19 = vadd.f32 %v3440_v18, %v4103_v60  ;;  %v2065_v22 = vpop.f32.mrb[121].mxu1 }
 0x3b5   : > { %v2066_v25 = vadd.f32 %v4103_v60, %v2065_v22  ;;  %v3441_v26 = vpop.f32.mrb[122].mxu1  ;;  %3514 = vmatprep.mubr.bf16.mxu0 %v2298_v16 }
 0x3b6   : > { %v2077_v27 = vadd.f32 %v3441_v26, %v4103_v60  ;;  %v2068_v29 = vpop.f32.mrb[123].mxu1  ;;  %3515 = vmatmul.mubr.bf16.gmra.mrb[116].mxu0 %v2299_v15  ;;  %v2250_v31 = vmax.f32 %v2074_v19, 0.0 }
 0x3b7   : > { %v2069_v30 = vadd.f32 %v4103_v60, %v2068_v29  ;;  %v2248_v33 = vmax.f32 %v2066_v25, 0.0 }
 0x3b8   : > { %v2251_v32 = vmax.f32 %v2077_v27, 0.0 }
 0x3b9   : > { %v2249_v34 = vmax.f32 %v2069_v30, 0.0 }
 0x3ba   : > { %v2301_v35 = vpack.c.bf16 %v2251_v32, %v2250_v31 }
 0x3bb   : > { %v2300_v36 = vpack.c.bf16 %v2249_v34, %v2248_v33  ;;  %v3444_v37 = vpop.f32.mrb[124].mxu1 }
 0x3bc   : > { %v2090_v38 = vadd.f32 %v3444_v37, %v4103_v60  ;;  %v2081_v39 = vpop.f32.mrb[125].mxu1 }
 0x3bd   : > { %v2082_v40 = vadd.f32 %v4103_v60, %v2081_v39  ;;  %v3445_v44 = vpop.f32.mrb[126].mxu1  ;;  %3518 = vmatprep.mubr.bf16.mxu0 %v2300_v36 }
 0x3be   : > { %v2093_v24 = vadd.f32 %v3445_v44, %v4103_v60  ;;  %v2084_v28 = vpop.f32.mrb[127].mxu1  ;;  %3519 = vmatmul.mubr.bf16.gmra.mrb[120].mxu0 %v2301_v35  ;;  %v2254_v20 = vmax.f32 %v2090_v38, 0.0 }
 0x3bf   : > { %v2085_v59 = vadd.f32 %v4103_v60, %v2084_v28  ;;  %v2252_v51 = vmax.f32 %v2082_v40, 0.0 }
 0x3c0   : > { %v2255_v23 = vmax.f32 %v2093_v24, 0.0 }
 0x3c1   : > { %v2253_v54 = vmax.f32 %v2085_v59, 0.0 }
 0x3c2   : > { %v2303_v17 = vpack.c.bf16 %v2255_v23, %v2254_v20 }
 0x3c3   : > { %v2302_v21 = vpack.c.bf16 %v2253_v54, %v2252_v51  ;;  %v3448_v41 = vpop.f32.mrb[128].mxu1 }
 0x3c4   : > { %v2106_v42 = vadd.f32 %v3448_v41, %v4103_v60  ;;  %v2097_v43 = vpop.f32.mrb[129].mxu1 }
 0x3c5   : > { %v2098_v45 = vadd.f32 %v4103_v60, %v2097_v43  ;;  %v3449_v46 = vpop.f32.mrb[130].mxu1  ;;  %3522 = vmatprep.mubr.bf16.mxu0 %v2302_v21 }
 0x3c6   : > { %v2109_v47 = vadd.f32 %v3449_v46, %v4103_v60  ;;  %v2100_v48 = vpop.f32.mrb[131].mxu1  ;;  %3523 = vmatmul.mubr.bf16.gmra.mrb[124].mxu0 %v2303_v17  ;;  %v2258_v50 = vmax.f32 %v2106_v42, 0.0 }
 0x3c7   : > { %v2101_v49 = vadd.f32 %v4103_v60, %v2100_v48  ;;  %v2256_v53 = vmax.f32 %v2098_v45, 0.0 }
 0x3c8   : > { %v2259_v52 = vmax.f32 %v2109_v47, 0.0 }
 0x3c9   : > { %v2257_v56 = vmax.f32 %v2101_v49, 0.0 }
 0x3ca   : > { %v2305_v57 = vpack.c.bf16 %v2259_v52, %v2258_v50 }
 0x3cb   : > { %v2304_v58 = vpack.c.bf16 %v2257_v56, %v2256_v53  ;;  %v3452_v61 = vpop.f32.mrb[132].mxu1 }
 0x3cc   : > { %v2122_v62 = vadd.f32 %v3452_v61, %v4103_v60  ;;  %v2113_v63 = vpop.f32.mrb[133].mxu1 }
 0x3cd   : > { %v2114_v0 = vadd.f32 %v4103_v60, %v2113_v63  ;;  %v3453_v55 = vpop.f32.mrb[134].mxu1  ;;  %3526 = vmatprep.mubr.bf16.mxu0 %v2304_v58 }
 0x3ce   : > { %v2125_v1 = vadd.f32 %v3453_v55, %v4103_v60  ;;  %v2116_v2 = vpop.f32.mrb[135].mxu1  ;;  %3527 = vmatmul.mubr.bf16.gmra.mrb[128].mxu0 %v2305_v57  ;;  %v2262_v4 = vmax.f32 %v2122_v62, 0.0 }
 0x3cf   : > { %v2117_v3 = vadd.f32 %v4103_v60, %v2116_v2  ;;  %v2260_v6 = vmax.f32 %v2114_v0, 0.0 }
 0x3d0   : > { %v2263_v5 = vmax.f32 %v2125_v1, 0.0 }
 0x3d1   : > { %v2261_v7 = vmax.f32 %v2117_v3, 0.0 }
 0x3d2   : > { %v2307_v8 = vpack.c.bf16 %v2263_v5, %v2262_v4 }
 0x3d3   : > { %v2306_v9 = vpack.c.bf16 %v2261_v7, %v2260_v6  ;;  %v3456_v10 = vpop.f32.mrb[136].mxu1 }
 0x3d4   : > { %v2138_v11 = vadd.f32 %v3456_v10, %v4103_v60  ;;  %v2129_v12 = vpop.f32.mrb[137].mxu1 }
 0x3d5   : > { %v2130_v13 = vadd.f32 %v4103_v60, %v2129_v12  ;;  %v3457_v14 = vpop.f32.mrb[138].mxu1  ;;  %3530 = vmatprep.mubr.bf16.mxu0 %v2306_v9 }
 0x3d6   : > { %v2141_v15 = vadd.f32 %v3457_v14, %v4103_v60  ;;  %v2132_v16 = vpop.f32.mrb[139].mxu1  ;;  %3531 = vmatmul.mubr.bf16.gmra.mrb[132].mxu0 %v2307_v8  ;;  %v2266_v19 = vmax.f32 %v2138_v11, 0.0 }
 0x3d7   : > { %v2133_v18 = vadd.f32 %v4103_v60, %v2132_v16  ;;  %v2264_v25 = vmax.f32 %v2130_v13, 0.0 }
 0x3d8   : > { %v2267_v22 = vmax.f32 %v2141_v15, 0.0 }
 0x3d9   : > { %v2265_v26 = vmax.f32 %v2133_v18, 0.0 }
 0x3da   : > { %v2309_v27 = vpack.c.bf16 %v2267_v22, %v2266_v19 }
 0x3db   : > { %v2308_v29 = vpack.c.bf16 %v2265_v26, %v2264_v25  ;;  %v3460_v30 = vpop.f32.mrb[140].mxu1 }
 0x3dc   : > { %v2154_v31 = vadd.f32 %v3460_v30, %v4103_v60  ;;  %v2145_v32 = vpop.f32.mrb[141].mxu1 }
 0x3dd   : > { %v2146_v33 = vadd.f32 %v4103_v60, %v2145_v32  ;;  %v3461_v34 = vpop.f32.mrb[142].mxu1  ;;  %3534 = vmatprep.mubr.bf16.mxu0 %v2308_v29 }
 0x3de   : > { %v2157_v35 = vadd.f32 %v3461_v34, %v4103_v60  ;;  %v2148_v36 = vpop.f32.mrb[143].mxu1  ;;  %3535 = vmatmul.mubr.bf16.gmra.mrb[136].mxu0 %v2309_v27  ;;  %v2270_v38 = vmax.f32 %v2154_v31, 0.0 }
 0x3df   : > { %v2149_v37 = vadd.f32 %v4103_v60, %v2148_v36  ;;  %v2268_v40 = vmax.f32 %v2146_v33, 0.0 }
 0x3e0   : > { %v2271_v39 = vmax.f32 %v2157_v35, 0.0 }
 0x3e1   : > { %v2269_v44 = vmax.f32 %v2149_v37, 0.0  ;;  %v4173_v37 = vld [vmem:[%s4314_s3 + $0x4] ss:$0 sm:$0xff] }
 0x3e2   : > { %v2311_v24 = vpack.c.bf16 %v2271_v39, %v2270_v38 }
 0x3e3   : > { %v2310_v28 = vpack.c.bf16 %v2269_v44, %v2268_v40  ;;  %v3464_v59 = vpop.f32.mrb[144].mxu1 }
 0x3e4   : > { %v2170_v20 = vadd.f32 %v3464_v59, %v4103_v60  ;;  %v2161_v23 = vpop.f32.mrb[145].mxu1 }
 0x3e5   : > { %v2162_v51 = vadd.f32 %v4103_v60, %v2161_v23  ;;  %v3465_v54 = vpop.f32.mrb[146].mxu1  ;;  %3538 = vmatprep.mubr.bf16.mxu0 %v2310_v28 }
 0x3e6   : > { %v2173_v17 = vadd.f32 %v3465_v54, %v4103_v60  ;;  %v2164_v21 = vpop.f32.mrb[147].mxu1  ;;  %3539 = vmatmul.mubr.bf16.gmra.mrb[140].mxu0 %v2311_v24  ;;  %v2274_v42 = vmax.f32 %v2170_v20, 0.0 }
 0x3e7   : > { %v2165_v41 = vadd.f32 %v4103_v60, %v2164_v21  ;;  %v2272_v45 = vmax.f32 %v2162_v51, 0.0 }
 0x3e8   : > { %v2275_v43 = vmax.f32 %v2173_v17, 0.0 }
 0x3e9   : > { %v2273_v46 = vmax.f32 %v2165_v41, 0.0 }
 0x3ea   : > { %v2313_v47 = vpack.c.bf16 %v2275_v43, %v2274_v42 }
 0x3eb   : > { %v2312_v48 = vpack.c.bf16 %v2273_v46, %v2272_v45  ;;  %v3468_v49 = vpop.f32.mrb[148].mxu1 }
 0x3ec   : > { %v2186_v50 = vadd.f32 %v3468_v49, %v4103_v60  ;;  %v2177_v52 = vpop.f32.mrb[149].mxu1 }
 0x3ed   : > { %v2178_v53 = vadd.f32 %v4103_v60, %v2177_v52  ;;  %v3469_v56 = vpop.f32.mrb[150].mxu1  ;;  %3542 = vmatprep.mubr.bf16.mxu0 %v2312_v48 }
 0x3ee   : > { %v2189_v57 = vadd.f32 %v3469_v56, %v4103_v60  ;;  %v2180_v58 = vpop.f32.mrb[151].mxu1  ;;  %3543 = vmatmul.mubr.bf16.gmra.mrb[144].mxu0 %v2313_v47  ;;  %v2278_v62 = vmax.f32 %v2186_v50, 0.0 }
 0x3ef   : > { %v2181_v61 = vadd.f32 %v4103_v60, %v2180_v58  ;;  %v2276_v0 = vmax.f32 %v2178_v53, 0.0 }
 0x3f0   : > { %v2279_v63 = vmax.f32 %v2189_v57, 0.0 }
 0x3f1   : > { %v2277_v55 = vmax.f32 %v2181_v61, 0.0 }
 0x3f2   : > { %v2315_v1 = vpack.c.bf16 %v2279_v63, %v2278_v62 }
 0x3f3   : > { %v2314_v2 = vpack.c.bf16 %v2277_v55, %v2276_v0  ;;  %v3472_v3 = vpop.f32.mrb[152].mxu1 }
 0x3f4   : > { %v2202_v4 = vadd.f32 %v3472_v3, %v4103_v60  ;;  %v2193_v5 = vpop.f32.mrb[153].mxu1 }
 0x3f5   : > { %v2194_v6 = vadd.f32 %v4103_v60, %v2193_v5  ;;  %v3473_v7 = vpop.f32.mrb[154].mxu1  ;;  %3546 = vmatprep.mubr.bf16.mxu0 %v2314_v2 }
 0x3f6   : > { %v2205_v8 = vadd.f32 %v3473_v7, %v4103_v60  ;;  %v2196_v9 = vpop.f32.mrb[155].mxu1  ;;  %3547 = vmatmul.mubr.bf16.gmra.mrb[148].mxu0 %v2315_v1  ;;  %v2282_v11 = vmax.f32 %v2202_v4, 0.0 }
 0x3f7   : > { %v2197_v10 = vadd.f32 %v4103_v60, %v2196_v9  ;;  %v2280_v13 = vmax.f32 %v2194_v6, 0.0 }
 0x3f8   : > { %v2283_v12 = vmax.f32 %v2205_v8, 0.0 }
 0x3f9   : > { %v2281_v14 = vmax.f32 %v2197_v10, 0.0 }
 0x3fa   : > { %v2317_v15 = vpack.c.bf16 %v2283_v12, %v2282_v11 }
 0x3fb   : > { %v2316_v16 = vpack.c.bf16 %v2281_v14, %v2280_v13  ;;  %v3476_v18 = vpop.f32.mrb[156].mxu1 }
 0x3fc   : > { %v2218_v19 = vadd.f32 %v3476_v18, %v4103_v60  ;;  %v2209_v22 = vpop.f32.mrb[157].mxu1 }
 0x3fd   : > { %v2210_v25 = vadd.f32 %v4103_v60, %v2209_v22  ;;  %v3477_v26 = vpop.f32.mrb[158].mxu1  ;;  %3550 = vmatprep.mubr.bf16.mxu0 %v2316_v16 }
 0x3fe   : > { %v2221_v27 = vadd.f32 %v3477_v26, %v4103_v60  ;;  %v2212_v29 = vpop.f32.mrb[159].mxu1  ;;  %3551 = vmatmul.mubr.bf16.gmra.mrb[152].mxu0 %v2317_v15  ;;  %v2286_v31 = vmax.f32 %v2218_v19, 0.0 }
 0x3ff   : > { %v2213_v30 = vadd.f32 %v4103_v60, %v2212_v29  ;;  %v2284_v33 = vmax.f32 %v2210_v25, 0.0 }
 0x400   : > { %v2287_v32 = vmax.f32 %v2221_v27, 0.0 }
 0x401   : > { %v2285_v34 = vmax.f32 %v2213_v30, 0.0 }
 0x402   : > { %v2319_v35 = vpack.c.bf16 %v2287_v32, %v2286_v31 }
 0x403   : > { %v2318_v36 = vpack.c.bf16 %v2285_v34, %v2284_v33 }
 0x405   : > { %3554 = vmatprep.mubr.bf16.mxu0 %v2318_v36 }
 0x406   : > { %3555 = vmatmul.mubr.bf16.gmra.mrb[156].mxu0 %v2319_v35 }
 0x461   : > { %v3496_v60 = vpop.f32.mrb[96].mxu0 }
 0x462   : > { %v2436_v38 = vadd.f32 %v3496_v60, %v4173_v37  ;;  %v2427_v39 = vpop.f32.mrb[97].mxu0 }
 0x463   : > { %v2428_v40 = vadd.f32 %v4173_v37, %v2427_v39  ;;  %v3497_v44 = vpop.f32.mrb[98].mxu0 }
 0x464   : > { %2684 = vst [vmem:[%s4178_s9 + $0x10] sm:$0xff] %v2436_v38  ;;  %v2439_v24 = vadd.f32 %v3497_v44, %v4173_v37  ;;  %v2430_v28 = vpop.f32.mrb[99].mxu0 }
 0x465   : > { %2682 = vst [vmem:[%s4178_s9] sm:$0xff] %v2428_v40  ;;  %v2431_v59 = vadd.f32 %v4173_v37, %v2430_v28 }
 0x466   : > { %2685 = vst [vmem:[%s4178_s9 + $0x18] sm:$0xff] %v2439_v24 }
 0x467   : > { %2683 = vst [vmem:[%s4178_s9 + $0x8] sm:$0xff] %v2431_v59 }
 0x469   : > { %v3500_v20 = vpop.f32.mrb[100].mxu0 }
 0x46a   : > { %v2452_v23 = vadd.f32 %v3500_v20, %v4173_v37  ;;  %v2443_v51 = vpop.f32.mrb[101].mxu0 }
 0x46b   : > { %v2444_v54 = vadd.f32 %v4173_v37, %v2443_v51  ;;  %v3501_v17 = vpop.f32.mrb[102].mxu0 }
 0x46c   : > { %2688 = vst [vmem:[%s4178_s9 + $0x30] sm:$0xff] %v2452_v23  ;;  %v2455_v21 = vadd.f32 %v3501_v17, %v4173_v37  ;;  %v2446_v41 = vpop.f32.mrb[103].mxu0 }
 0x46d   : > { %2686 = vst [vmem:[%s4178_s9 + $0x20] sm:$0xff] %v2444_v54  ;;  %v2447_v42 = vadd.f32 %v4173_v37, %v2446_v41 }
 0x46e   : > { %2689 = vst [vmem:[%s4178_s9 + $0x38] sm:$0xff] %v2455_v21 }
 0x46f   : > { %2687 = vst [vmem:[%s4178_s9 + $0x28] sm:$0xff] %v2447_v42 }
 0x471   : > { %v3504_v43 = vpop.f32.mrb[104].mxu0 }
 0x472   : > { %v2468_v45 = vadd.f32 %v3504_v43, %v4173_v37  ;;  %v2459_v46 = vpop.f32.mrb[105].mxu0 }
 0x473   : > { %v2460_v47 = vadd.f32 %v4173_v37, %v2459_v46  ;;  %v3505_v48 = vpop.f32.mrb[106].mxu0 }
 0x474   : > { %2692 = vst [vmem:[%s4178_s9 + $0x50] sm:$0xff] %v2468_v45  ;;  %v2471_v49 = vadd.f32 %v3505_v48, %v4173_v37  ;;  %v2462_v50 = vpop.f32.mrb[107].mxu0 }
 0x475   : > { %2690 = vst [vmem:[%s4178_s9 + $0x40] sm:$0xff] %v2460_v47  ;;  %v2463_v52 = vadd.f32 %v4173_v37, %v2462_v50 }
 0x476   : > { %2693 = vst [vmem:[%s4178_s9 + $0x58] sm:$0xff] %v2471_v49 }
 0x477   : > { %2691 = vst [vmem:[%s4178_s9 + $0x48] sm:$0xff] %v2463_v52 }
 0x479   : > { %v3508_v53 = vpop.f32.mrb[108].mxu0 }
 0x47a   : > { %v2484_v56 = vadd.f32 %v3508_v53, %v4173_v37  ;;  %v2475_v57 = vpop.f32.mrb[109].mxu0 }
 0x47b   : > { %v2476_v58 = vadd.f32 %v4173_v37, %v2475_v57  ;;  %v3509_v61 = vpop.f32.mrb[110].mxu0 }
 0x47c   : > { %2696 = vst [vmem:[%s4178_s9 + $0x70] sm:$0xff] %v2484_v56  ;;  %v2487_v62 = vadd.f32 %v3509_v61, %v4173_v37  ;;  %v2478_v63 = vpop.f32.mrb[111].mxu0 }
 0x47d   : > { %2694 = vst [vmem:[%s4178_s9 + $0x60] sm:$0xff] %v2476_v58  ;;  %v2479_v0 = vadd.f32 %v4173_v37, %v2478_v63 }
 0x47e   : > { %2697 = vst [vmem:[%s4178_s9 + $0x78] sm:$0xff] %v2487_v62 }
 0x47f   : > { %2695 = vst [vmem:[%s4178_s9 + $0x68] sm:$0xff] %v2479_v0 }
 0x481   : > { %v3512_v55 = vpop.f32.mrb[112].mxu0 }
 0x482   : > { %v2500_v1 = vadd.f32 %v3512_v55, %v4173_v37  ;;  %v2491_v2 = vpop.f32.mrb[113].mxu0 }
 0x483   : > { %v2492_v3 = vadd.f32 %v4173_v37, %v2491_v2  ;;  %v3513_v4 = vpop.f32.mrb[114].mxu0 }
 0x484   : > { %2700 = vst [vmem:[%s4178_s9 + $0x90] sm:$0xff] %v2500_v1  ;;  %v2503_v5 = vadd.f32 %v3513_v4, %v4173_v37  ;;  %v2494_v6 = vpop.f32.mrb[115].mxu0 }
 0x485   : > { %2698 = vst [vmem:[%s4178_s9 + $0x80] sm:$0xff] %v2492_v3  ;;  %v2495_v7 = vadd.f32 %v4173_v37, %v2494_v6 }
 0x486   : > { %2701 = vst [vmem:[%s4178_s9 + $0x98] sm:$0xff] %v2503_v5 }
 0x487   : > { %2699 = vst [vmem:[%s4178_s9 + $0x88] sm:$0xff] %v2495_v7 }
 0x489   : > { %v3516_v8 = vpop.f32.mrb[116].mxu0 }
 0x48a   : > { %v2516_v9 = vadd.f32 %v3516_v8, %v4173_v37  ;;  %v2507_v10 = vpop.f32.mrb[117].mxu0 }
 0x48b   : > { %v2508_v11 = vadd.f32 %v4173_v37, %v2507_v10  ;;  %v3517_v12 = vpop.f32.mrb[118].mxu0 }
 0x48c   : > { %2704 = vst [vmem:[%s4178_s9 + $0xb0] sm:$0xff] %v2516_v9  ;;  %v2519_v13 = vadd.f32 %v3517_v12, %v4173_v37  ;;  %v2510_v14 = vpop.f32.mrb[119].mxu0 }
 0x48d   : > { %2702 = vst [vmem:[%s4178_s9 + $0xa0] sm:$0xff] %v2508_v11  ;;  %v2511_v15 = vadd.f32 %v4173_v37, %v2510_v14 }
 0x48e   : > { %2705 = vst [vmem:[%s4178_s9 + $0xb8] sm:$0xff] %v2519_v13 }
 0x48f   : > { %2703 = vst [vmem:[%s4178_s9 + $0xa8] sm:$0xff] %v2511_v15 }
 0x491   : > { %v3520_v16 = vpop.f32.mrb[120].mxu0 }
 0x492   : > { %v2532_v18 = vadd.f32 %v3520_v16, %v4173_v37  ;;  %v2523_v19 = vpop.f32.mrb[121].mxu0 }
 0x493   : > { %v2524_v22 = vadd.f32 %v4173_v37, %v2523_v19  ;;  %v3521_v25 = vpop.f32.mrb[122].mxu0 }
 0x494   : > { %2708 = vst [vmem:[%s4178_s9 + $0xd0] sm:$0xff] %v2532_v18  ;;  %v2535_v26 = vadd.f32 %v3521_v25, %v4173_v37  ;;  %v2526_v27 = vpop.f32.mrb[123].mxu0 }
 0x495   : > { %2706 = vst [vmem:[%s4178_s9 + $0xc0] sm:$0xff] %v2524_v22  ;;  %v2527_v29 = vadd.f32 %v4173_v37, %v2526_v27 }
 0x496   : > { %2709 = vst [vmem:[%s4178_s9 + $0xd8] sm:$0xff] %v2535_v26 }
 0x497   : > { %2707 = vst [vmem:[%s4178_s9 + $0xc8] sm:$0xff] %v2527_v29 }
 0x499   : > { %v3524_v30 = vpop.f32.mrb[124].mxu0 }
 0x49a   : > { %v2548_v31 = vadd.f32 %v3524_v30, %v4173_v37  ;;  %v2539_v32 = vpop.f32.mrb[125].mxu0 }
 0x49b   : > { %v2540_v33 = vadd.f32 %v4173_v37, %v2539_v32  ;;  %v3525_v34 = vpop.f32.mrb[126].mxu0 }
 0x49c   : > { %2712 = vst [vmem:[%s4178_s9 + $0xf0] sm:$0xff] %v2548_v31  ;;  %v2551_v35 = vadd.f32 %v3525_v34, %v4173_v37  ;;  %v2542_v36 = vpop.f32.mrb[127].mxu0 }
 0x49d   : > { %2710 = vst [vmem:[%s4178_s9 + $0xe0] sm:$0xff] %v2540_v33  ;;  %v2543_v60 = vadd.f32 %v4173_v37, %v2542_v36 }
 0x49e   : > { %2713 = vst [vmem:[%s4178_s9 + $0xf8] sm:$0xff] %v2551_v35 }
 0x49f   : > { %2711 = vst [vmem:[%s4178_s9 + $0xe8] sm:$0xff] %v2543_v60 }
 0x4a1   : > { %v3528_v38 = vpop.f32.mrb[128].mxu0 }
 0x4a2   : > { %v2564_v39 = vadd.f32 %v3528_v38, %v4173_v37  ;;  %v2555_v40 = vpop.f32.mrb[129].mxu0 }
 0x4a3   : > { %v2556_v44 = vadd.f32 %v4173_v37, %v2555_v40  ;;  %v3529_v24 = vpop.f32.mrb[130].mxu0 }
 0x4a4   : > { %2716 = vst [vmem:[%s4178_s9 + $0x110] sm:$0xff] %v2564_v39  ;;  %v2567_v28 = vadd.f32 %v3529_v24, %v4173_v37  ;;  %v2558_v59 = vpop.f32.mrb[131].mxu0 }
 0x4a5   : > { %2714 = vst [vmem:[%s4178_s9 + $0x100] sm:$0xff] %v2556_v44  ;;  %v2559_v20 = vadd.f32 %v4173_v37, %v2558_v59 }
 0x4a6   : > { %2717 = vst [vmem:[%s4178_s9 + $0x118] sm:$0xff] %v2567_v28 }
 0x4a7   : > { %2715 = vst [vmem:[%s4178_s9 + $0x108] sm:$0xff] %v2559_v20 }
 0x4a9   : > { %v3532_v23 = vpop.f32.mrb[132].mxu0 }
 0x4aa   : > { %v2580_v51 = vadd.f32 %v3532_v23, %v4173_v37  ;;  %v2571_v54 = vpop.f32.mrb[133].mxu0 }
 0x4ab   : > { %v2572_v17 = vadd.f32 %v4173_v37, %v2571_v54  ;;  %v3533_v21 = vpop.f32.mrb[134].mxu0 }
 0x4ac   : > { %2720 = vst [vmem:[%s4178_s9 + $0x130] sm:$0xff] %v2580_v51  ;;  %v2583_v41 = vadd.f32 %v3533_v21, %v4173_v37  ;;  %v2574_v42 = vpop.f32.mrb[135].mxu0 }
 0x4ad   : > { %2718 = vst [vmem:[%s4178_s9 + $0x120] sm:$0xff] %v2572_v17  ;;  %v2575_v43 = vadd.f32 %v4173_v37, %v2574_v42 }
 0x4ae   : > { %2721 = vst [vmem:[%s4178_s9 + $0x138] sm:$0xff] %v2583_v41 }
 0x4af   : > { %2719 = vst [vmem:[%s4178_s9 + $0x128] sm:$0xff] %v2575_v43 }
 0x4b1   : > { %v3536_v45 = vpop.f32.mrb[136].mxu0 }
 0x4b2   : > { %v2596_v46 = vadd.f32 %v3536_v45, %v4173_v37  ;;  %v2587_v47 = vpop.f32.mrb[137].mxu0 }
 0x4b3   : > { %v2588_v48 = vadd.f32 %v4173_v37, %v2587_v47  ;;  %v3537_v49 = vpop.f32.mrb[138].mxu0 }
 0x4b4   : > { %2724 = vst [vmem:[%s4178_s9 + $0x150] sm:$0xff] %v2596_v46  ;;  %v2599_v50 = vadd.f32 %v3537_v49, %v4173_v37  ;;  %v2590_v52 = vpop.f32.mrb[139].mxu0 }
 0x4b5   : > { %2722 = vst [vmem:[%s4178_s9 + $0x140] sm:$0xff] %v2588_v48  ;;  %v2591_v53 = vadd.f32 %v4173_v37, %v2590_v52 }
 0x4b6   : > { %2725 = vst [vmem:[%s4178_s9 + $0x158] sm:$0xff] %v2599_v50 }
 0x4b7   : > { %2723 = vst [vmem:[%s4178_s9 + $0x148] sm:$0xff] %v2591_v53 }
 0x4b9   : > { %v3540_v56 = vpop.f32.mrb[140].mxu0 }
 0x4ba   : > { %v2612_v57 = vadd.f32 %v3540_v56, %v4173_v37  ;;  %v2603_v58 = vpop.f32.mrb[141].mxu0 }
 0x4bb   : > { %v2604_v61 = vadd.f32 %v4173_v37, %v2603_v58  ;;  %v3541_v62 = vpop.f32.mrb[142].mxu0 }
 0x4bc   : > { %2728 = vst [vmem:[%s4178_s9 + $0x170] sm:$0xff] %v2612_v57  ;;  %v2615_v63 = vadd.f32 %v3541_v62, %v4173_v37  ;;  %v2606_v0 = vpop.f32.mrb[143].mxu0 }
 0x4bd   : > { %2726 = vst [vmem:[%s4178_s9 + $0x160] sm:$0xff] %v2604_v61  ;;  %v2607_v55 = vadd.f32 %v4173_v37, %v2606_v0 }
 0x4be   : > { %2729 = vst [vmem:[%s4178_s9 + $0x178] sm:$0xff] %v2615_v63 }
 0x4bf   : > { %2727 = vst [vmem:[%s4178_s9 + $0x168] sm:$0xff] %v2607_v55 }
 0x4c1   : > { %v3544_v1 = vpop.f32.mrb[144].mxu0 }
 0x4c2   : > { %v2628_v2 = vadd.f32 %v3544_v1, %v4173_v37  ;;  %v2619_v3 = vpop.f32.mrb[145].mxu0 }
 0x4c3   : > { %v2620_v4 = vadd.f32 %v4173_v37, %v2619_v3  ;;  %v3545_v5 = vpop.f32.mrb[146].mxu0 }
 0x4c4   : > { %2732 = vst [vmem:[%s4178_s9 + $0x190] sm:$0xff] %v2628_v2  ;;  %v2631_v6 = vadd.f32 %v3545_v5, %v4173_v37  ;;  %v2622_v7 = vpop.f32.mrb[147].mxu0 }
 0x4c5   : > { %2730 = vst [vmem:[%s4178_s9 + $0x180] sm:$0xff] %v2620_v4  ;;  %v2623_v8 = vadd.f32 %v4173_v37, %v2622_v7 }
 0x4c6   : > { %2733 = vst [vmem:[%s4178_s9 + $0x198] sm:$0xff] %v2631_v6 }
 0x4c7   : > { %2731 = vst [vmem:[%s4178_s9 + $0x188] sm:$0xff] %v2623_v8 }
 0x4c9   : > { %v3548_v9 = vpop.f32.mrb[148].mxu0 }
 0x4ca   : > { %v2644_v10 = vadd.f32 %v3548_v9, %v4173_v37  ;;  %v2635_v11 = vpop.f32.mrb[149].mxu0 }
 0x4cb   : > { %v2636_v12 = vadd.f32 %v4173_v37, %v2635_v11  ;;  %v3549_v13 = vpop.f32.mrb[150].mxu0 }
 0x4cc   : > { %2736 = vst [vmem:[%s4178_s9 + $0x1b0] sm:$0xff] %v2644_v10  ;;  %v2647_v14 = vadd.f32 %v3549_v13, %v4173_v37  ;;  %v2638_v15 = vpop.f32.mrb[151].mxu0 }
 0x4cd   : > { %2734 = vst [vmem:[%s4178_s9 + $0x1a0] sm:$0xff] %v2636_v12  ;;  %v2639_v16 = vadd.f32 %v4173_v37, %v2638_v15 }
 0x4ce   : > { %2737 = vst [vmem:[%s4178_s9 + $0x1b8] sm:$0xff] %v2647_v14 }
 0x4cf   : > { %2735 = vst [vmem:[%s4178_s9 + $0x1a8] sm:$0xff] %v2639_v16 }
 0x4d1   : > { %v3552_v18 = vpop.f32.mrb[152].mxu0 }
 0x4d2   : > { %v2660_v19 = vadd.f32 %v3552_v18, %v4173_v37  ;;  %v2651_v22 = vpop.f32.mrb[153].mxu0 }
 0x4d3   : > { %v2652_v25 = vadd.f32 %v4173_v37, %v2651_v22  ;;  %v3553_v26 = vpop.f32.mrb[154].mxu0 }
 0x4d4   : > { %2740 = vst [vmem:[%s4178_s9 + $0x1d0] sm:$0xff] %v2660_v19  ;;  %v2663_v27 = vadd.f32 %v3553_v26, %v4173_v37  ;;  %v2654_v29 = vpop.f32.mrb[155].mxu0 }
 0x4d5   : > { %2738 = vst [vmem:[%s4178_s9 + $0x1c0] sm:$0xff] %v2652_v25  ;;  %v2655_v30 = vadd.f32 %v4173_v37, %v2654_v29 }
 0x4d6   : > { %2741 = vst [vmem:[%s4178_s9 + $0x1d8] sm:$0xff] %v2663_v27 }
 0x4d7   : > { %2739 = vst [vmem:[%s4178_s9 + $0x1c8] sm:$0xff] %v2655_v30 }
 0x4d9   : > { %v3556_v31 = vpop.f32.mrb[156].mxu0 }
 0x4da   : > { %v2676_v32 = vadd.f32 %v3556_v31, %v4173_v37  ;;  %v2667_v33 = vpop.f32.mrb[157].mxu0 }
 0x4db   : > { %v2668_v34 = vadd.f32 %v4173_v37, %v2667_v33  ;;  %v3557_v35 = vpop.f32.mrb[158].mxu0 }
 0x4dc   : > { %2744 = vst [vmem:[%s4178_s9 + $0x1f0] sm:$0xff] %v2676_v32  ;;  %v2679_v36 = vadd.f32 %v3557_v35, %v4173_v37  ;;  %v2670_v60 = vpop.f32.mrb[159].mxu0 }
 0x4dd   : > { %2742 = vst [vmem:[%s4178_s9 + $0x1e0] sm:$0xff] %v2668_v34  ;;  %v2671_v38 = vadd.f32 %v4173_v37, %v2670_v60 }
 0x4de   : > { %2745 = vst [vmem:[%s4178_s9 + $0x1f8] sm:$0xff] %v2679_v36 }
 0x4df   : > { %2743 = vst [vmem:[%s4178_s9 + $0x1e8] sm:$0xff] %v2671_v38 }
 0x4e0 PF: > { %s14_s15 = sadd.s32 1, %s3648_s15  }
 0x4e1   : > { %p11_p4 = scmp.ge.s32.totalorder %s14_s15, 4  }
 0x4e3   :  { %13 = sbr.rel (!%p11_p4) target bundleno = 1 (0x1), region = 73 }

</bundles_post_ra>
